<compile_context>
chip_gen: v7x
topology: tpu7x:2x2x1
jax: 0.10.0
libtpu: 0.0.40
codegen_flags: <defaults>
</compile_context>

<pallas_src>
import functools

import jax
import jax.numpy as jnp
import numpy as np
from jax.experimental import pallas as pl
from jax.experimental.pallas import tpu as pltpu


def _resblock_kernel(x_ref, rhs1_ref, rhs2_ref, gnA_ref, rows_ref, o_ref,
                     *, Bb, H, W, Cout, eps):
    """Batch-block residual block in lane-dense (Bb, H, W*C) layout.

    x_ref    : (Bb, H, W*Cin)        flattened NHWC input block
    rhs1_ref : (3*W*Cin, 2*W*Cout)   K-stacked conv1 bands (kh=0,1,2) | 1x1 residual band
    rhs2_ref : (3*W*Cout, W*Cout)    K-stacked conv2 bands
    gnA_ref  : (W*Cout, W*Cout)      group-averaging matrix (1/(H*W*cg) within a group)
    rows_ref : (8, W*Cout)           [bias1; g1; be1; bias2; g2; be2; b_res; 0]
    o_ref    : (Bb, H, W*Cout)       lane-dense output slab
    """
    f32 = jnp.float32
    N = W * Cout
    Kin = x_ref.shape[2]

    # ---- hoisted constant loads (JAX does not CSE broadcasts / repeated loads) ----
    rhs1 = rhs1_ref[...]
    rhs2 = rhs2_ref[...]
    gnA = gnA_ref[...]
    rows = rows_ref[...]
    bias1, g1, be1 = rows[0:1], rows[1:2], rows[2:3]
    bias2, g2, be2 = rows[3:4], rows[4:5], rows[5:6]
    b_res = rows[6:7]
    zrow_in = jnp.zeros((Bb, 1, Kin), f32)
    zrow_n = jnp.zeros((Bb, 1, N), f32)

    def shifted_cat(a, zrow):
        # [a[h-1] | a[h] | a[h+1]] along lanes, zero rows at the top/bottom image border
        # (conv pad=1 folded in).  Shifts are applied to the *inputs* (narrow K), not the
        # matmul results.
        # TODO(synk): pltpu.roll(a, +/-1, axis=1) + a precomputed edge mask would move the
        # vertical shift onto the XLU slot; kept as sublane concats for guaranteed semantics.
        down = jnp.concatenate([zrow, a[:, :-1, :]], axis=1)   # out[h] = a[h-1]
        up = jnp.concatenate([a[:, 1:, :], zrow], axis=1)      # out[h] = a[h+1]
        return jnp.concatenate([down, a, up], axis=2)

    def silu(h):
        # exact sigmoid via tanh: one EUP transcendental, no VPU divide
        return h * (0.5 * (jnp.tanh(0.5 * h) + 1.0))

    def group_norm(h3, gamma, beta):
        # Per-sample stats; sum and sum-of-squares packed into one group-averaging matmul.
        s1 = jnp.sum(h3, axis=1)                                    # (Bb, N)
        s2 = jnp.sum(h3 * h3, axis=1)                               # (Bb, N)
        g = jnp.dot(jnp.concatenate([s1, s2], axis=0), gnA,
                    preferred_element_type=f32)                     # (2*Bb, N)
        mean = g[:Bb].reshape(Bb, 1, N)
        ex2 = g[Bb:].reshape(Bb, 1, N)
        inv = jax.lax.rsqrt(ex2 - mean * mean + eps)
        return (h3 - mean) * inv * gamma + beta

    x3 = x_ref[...]                                                 # (Bb, H, Kin)

    # ---- conv1 (3x3, pad=1) + fused 1x1 residual: one MXU pass, M=Bb*H, K=3*Kin, Nout=2N ----
    lhs1 = shifted_cat(x3, zrow_in).reshape(Bb * H, 3 * Kin)
    y = jnp.dot(lhs1, rhs1, preferred_element_type=f32)             # (Bb*H, 2N)
    h1_pre = (y[:, :N] + bias1).reshape(Bb, H, N)
    res = (y[:, N:] + b_res).reshape(Bb, H, N)

    h1 = silu(group_norm(h1_pre, g1, be1))                          # (Bb, H, N)

    # ---- conv2 (3x3, pad=1): one MXU pass, K=3N ----
    lhs2 = shifted_cat(h1, zrow_n).reshape(Bb * H, 3 * N)
    h2_pre = (jnp.dot(lhs2, rhs2, preferred_element_type=f32) + bias2).reshape(Bb, H, N)

    h2 = silu(group_norm(h2_pre, g2, be2))

    o_ref[...] = h2 + res


def _band_weights(w_oihw, W):
    """torch conv weight (Cout, Cin, 3, 3) -> per-kh banded matrices, 3 x (W*Cin, W*Cout).

    band_kh[(w+kw-1)*Cin + ci, w*Cout + co] = weight[co, ci, kh, kw]; out-of-range
    horizontal taps (left/right image border) are absent -> zero padding built in.
    """
    wt = jnp.transpose(w_oihw, (2, 3, 1, 0)).astype(jnp.float32)   # (3, 3, Cin, Cout)
    bands = []
    for kh in range(3):
        band = 0.0
        for kw in range(3):
            band = band + jnp.kron(jnp.eye(W, k=1 - kw, dtype=jnp.float32), wt[kh, kw])
        bands.append(band)
    return bands


def residual_block_pallas(x_nchw, params, *, groups=8, eps=1e-5, batch_block=None):
    B, Cin, H, W = x_nchw.shape
    Cout = params["w1"].shape[0]
    Kin, N = W * Cin, W * Cout
    Bb = B if batch_block is None else batch_block   # pass B//2 on v7x (2 TensorCores)
    assert B % Bb == 0, "batch_block must divide the batch size"

    # NCHW -> lane-dense (B, H, W*Cin).
    # TODO(synk): in an NHWC end-to-end pipeline this transpose (and the one on the way out)
    # disappears; at this size the two XLA transposes cost on the order of the kernel itself.
    x = jnp.transpose(x_nchw, (0, 2, 3, 1)).astype(jnp.float32).reshape(B, H, Kin)

    band1 = _band_weights(params["w1"], W)                          # 3 x (Kin, N)
    band2 = _band_weights(params["w2"], W)                          # 3 x (N, N)

    if "wr" in params:                                              # in_channels != out_channels
        wr_t = jnp.transpose(params["wr"].reshape(Cout, Cin), (1, 0)).astype(jnp.float32)
        br = params["br"].astype(jnp.float32)
    else:                                                           # identity residual path
        wr_t = jnp.eye(Cin, dtype=jnp.float32)
        br = jnp.zeros((Cout,), jnp.float32)
    band_r = jnp.kron(jnp.eye(W, dtype=jnp.float32), wr_t)          # (Kin, N)

    # conv1 K-stacked bands, widened with the residual band (only the un-shifted middle
    # K block carries it).
    zkin = jnp.zeros((Kin, N), jnp.float32)
    rhs1 = jnp.concatenate(
        [jnp.concatenate(band1, axis=0),
         jnp.concatenate([zkin, band_r, zkin], axis=0)], axis=1)    # (3*Kin, 2N)
    rhs2 = jnp.concatenate(band2, axis=0)                           # (3N, N)
    # TODO(synk): for large W*C the dense bands scale as (W*C)^2 and are ~2/3 zeros; tile the
    # band matmul over its block-diagonal structure (k grid axis) before they outgrow VMEM,
    # and single-buffer the constant weight slabs (pipeline_mode=pl.Buffered(1)) on v7x.

    tile = lambda v: jnp.tile(jnp.asarray(v, jnp.float32).reshape(-1), W).reshape(1, N)
    rows = jnp.concatenate(
        [tile(params["b1"]), tile(params["g1"]), tile(params["be1"]),
         tile(params["b2"]), tile(params["g2"]), tile(params["be2"]),
         tile(br), jnp.zeros((1, N), jnp.float32)], axis=0)          # (8, N)

    # Group-averaging matrix: gnA[l, l'] = 1/(H*W*cg) iff lanes l, l' are in the same group
    # (lane l = w*Cout + c  ->  group = (l % Cout) // cg).
    cg = Cout // groups
    lane_grp = (np.arange(N) % Cout) // cg
    gnA = jnp.asarray((lane_grp[:, None] == lane_grp[None, :]).astype(np.float32)
                      / float(H * W * cg))

    kernel = functools.partial(_resblock_kernel, Bb=Bb, H=H, W=W, Cout=Cout, eps=eps)

    def full(arr):
        nd = arr.ndim
        return pl.BlockSpec(arr.shape, lambda b, _nd=nd: (0,) * _nd)

    out = pl.pallas_call(
        kernel,
        out_shape=jax.ShapeDtypeStruct((B, H, N), jnp.float32),
        grid_spec=pltpu.PrefetchScalarGridSpec(
            num_scalar_prefetch=0,
            grid=(B // Bb,),
            in_specs=[
                pl.BlockSpec((Bb, H, Kin), lambda b: (b, 0, 0)),    # x (batch folded into M)
                full(rhs1), full(rhs2), full(gnA), full(rows),
            ],
            out_specs=pl.BlockSpec((Bb, H, N), lambda b: (b, 0, 0)),
        ),
        compiler_params=pltpu.CompilerParams(dimension_semantics=("parallel",)),
    )(x, rhs1, rhs2, gnA, rows)

    # (B, H, W*Cout) -> NCHW to match the torch module's contract
    return jnp.transpose(out.reshape(B, H, W, Cout), (0, 3, 1, 2))


# ---------------- pure-JAX reference (for correctness check) ----------------
def _ref_forward(x, params, *, groups=8, eps=1e-5):
    dn = ("NCHW", "OIHW", "NCHW")

    def conv(h, w, b, pad):
        y = jax.lax.conv_general_dilated(h, w, (1, 1), ((pad, pad), (pad, pad)),
                                         dimension_numbers=dn)
        return y + b[None, :, None, None]

    def gn(h, gamma, beta):
        B, C, H, W = h.shape
        hg = h.reshape(B, groups, C // groups, H, W)
        m = hg.mean(axis=(2, 3, 4), keepdims=True)
        v = ((hg - m) ** 2).mean(axis=(2, 3, 4), keepdims=True)
        hn = ((hg - m) / jnp.sqrt(v + eps)).reshape(B, C, H, W)
        return hn * gamma[None, :, None, None] + beta[None, :, None, None]

    silu = lambda h: h * jax.nn.sigmoid(h)
    res = conv(x, params["wr"], params["br"], 0) if "wr" in params else x
    h = silu(gn(conv(x, params["w1"], params["b1"], 1), params["g1"], params["be1"]))
    h = silu(gn(conv(h, params["w2"], params["b2"], 1), params["g2"], params["be2"]))
    return h + res


if __name__ == "__main__":
    B, Cin, Cout, H, W = 2, 8, 16, 16, 16     # in_channels != out_channels -> 1x1 residual conv
    keys = jax.random.split(jax.random.PRNGKey(0), 11)
    params = {
        "w1": 0.10 * jax.random.normal(keys[0], (Cout, Cin, 3, 3), jnp.float32),
        "b1": 0.05 * jax.random.normal(keys[1], (Cout,), jnp.float32),
        "w2": 0.10 * jax.random.normal(keys[2], (Cout, Cout, 3, 3), jnp.float32),
        "b2": 0.05 * jax.random.normal(keys[3], (Cout,), jnp.float32),
        "wr": 0.10 * jax.random.normal(keys[4], (Cout, Cin, 1, 1), jnp.float32),
        "br": 0.05 * jax.random.normal(keys[5], (Cout,), jnp.float32),
        "g1": 1.0 + 0.1 * jax.random.normal(keys[6], (Cout,), jnp.float32),
        "be1": 0.1 * jax.random.normal(keys[7], (Cout,), jnp.float32),
        "g2": 1.0 + 0.1 * jax.random.normal(keys[8], (Cout,), jnp.float32),
        "be2": 0.1 * jax.random.normal(keys[9], (Cout,), jnp.float32),
    }
    x = jax.random.normal(keys[10], (B, Cin, H, W), jnp.float32)

    out = jax.block_until_ready(residual_block_pallas(x, params))
    ref = jax.block_until_ready(_ref_forward(x, params))
    np.testing.assert_allclose(np.asarray(out), np.asarray(ref), atol=1e-3, rtol=1e-3)
    print("KERNEL_OK")
</pallas_src>

<mosaic_0001>
module attributes {stable_mosaic.version = 11 : i64} {
  func.func @_resblock_kernel(%arg0: i32, %arg1: memref<2x16x128xf32, #tpu.memory_space<vmem>>, %arg2: memref<384x512xf32, #tpu.memory_space<vmem>>, %arg3: memref<768x256xf32, #tpu.memory_space<vmem>>, %arg4: memref<256x256xf32, #tpu.memory_space<vmem>>, %arg5: memref<8x256xf32, #tpu.memory_space<vmem>>, %arg6: memref<2x16x256xf32, #tpu.memory_space<vmem>>) attributes {dimension_semantics = [#tpu.dimension_semantics<parallel>], iteration_bounds = array<i64: 1>, scalar_prefetch = 0 : i64, scratch_operands = 0 : i64, tpu.core_type = #tpu.core_type<tc>, window_params = [{transform_indices = @transform_0, window_bounds = array<i64: 2, 16, 128>}, {pipeline_mode = #tpu.pipeline_mode<synchronous>, transform_indices = @transform_1, window_bounds = array<i64: 384, 512>}, {pipeline_mode = #tpu.pipeline_mode<synchronous>, transform_indices = @transform_2, window_bounds = array<i64: 768, 256>}, {pipeline_mode = #tpu.pipeline_mode<synchronous>, transform_indices = @transform_3, window_bounds = array<i64: 256, 256>}, {pipeline_mode = #tpu.pipeline_mode<synchronous>, transform_indices = @transform_4, window_bounds = array<i64: 8, 256>}, {transform_indices = @transform_5, window_bounds = array<i64: 2, 16, 256>}]} {
    %c0 = arith.constant 0 : index
    %c0_0 = arith.constant 0 : index
    %0 = vector.load %arg2[%c0, %c0_0] : memref<384x512xf32, #tpu.memory_space<vmem>>, vector<384x512xf32>
    %c0_1 = arith.constant 0 : index
    %c0_2 = arith.constant 0 : index
    %1 = vector.load %arg3[%c0_1, %c0_2] : memref<768x256xf32, #tpu.memory_space<vmem>>, vector<768x256xf32>
    %c0_3 = arith.constant 0 : index
    %c0_4 = arith.constant 0 : index
    %2 = vector.load %arg4[%c0_3, %c0_4] : memref<256x256xf32, #tpu.memory_space<vmem>>, vector<256x256xf32>
    %c0_5 = arith.constant 0 : index
    %c0_6 = arith.constant 0 : index
    %3 = vector.load %arg5[%c0_5, %c0_6] : memref<8x256xf32, #tpu.memory_space<vmem>>, vector<8x256xf32>
    %4 = vector.extract_strided_slice %3 {offsets = [0, 0], sizes = [1, 256], strides = [1, 1]} : vector<8x256xf32> to vector<1x256xf32>
    %5 = vector.extract_strided_slice %3 {offsets = [1, 0], sizes = [1, 256], strides = [1, 1]} : vector<8x256xf32> to vector<1x256xf32>
    %6 = vector.extract_strided_slice %3 {offsets = [2, 0], sizes = [1, 256], strides = [1, 1]} : vector<8x256xf32> to vector<1x256xf32>
    %7 = vector.extract_strided_slice %3 {offsets = [3, 0], sizes = [1, 256], strides = [1, 1]} : vector<8x256xf32> to vector<1x256xf32>
    %8 = vector.extract_strided_slice %3 {offsets = [4, 0], sizes = [1, 256], strides = [1, 1]} : vector<8x256xf32> to vector<1x256xf32>
    %9 = vector.extract_strided_slice %3 {offsets = [5, 0], sizes = [1, 256], strides = [1, 1]} : vector<8x256xf32> to vector<1x256xf32>
    %10 = vector.extract_strided_slice %3 {offsets = [6, 0], sizes = [1, 256], strides = [1, 1]} : vector<8x256xf32> to vector<1x256xf32>
    %cst = arith.constant 0.000000e+00 : f32
    %11 = vector.broadcast %cst : f32 to vector<2x1x128xf32>
    %cst_7 = arith.constant 0.000000e+00 : f32
    %12 = vector.broadcast %cst_7 : f32 to vector<2x1x256xf32>
    %c0_8 = arith.constant 0 : index
    %c0_9 = arith.constant 0 : index
    %c0_10 = arith.constant 0 : index
    %13 = vector.load %arg1[%c0_8, %c0_9, %c0_10] : memref<2x16x128xf32, #tpu.memory_space<vmem>>, vector<2x16x128xf32>
    %14 = vector.extract_strided_slice %13 {offsets = [0, 0, 0], sizes = [2, 15, 128], strides = [1, 1, 1]} : vector<2x16x128xf32> to vector<2x15x128xf32>
    %15 = tpu.concatenate %11, %14 in 1 : vector<2x1x128xf32>, vector<2x15x128xf32> -> vector<2x16x128xf32>
    %16 = vector.extract_strided_slice %13 {offsets = [0, 1, 0], sizes = [2, 15, 128], strides = [1, 1, 1]} : vector<2x16x128xf32> to vector<2x15x128xf32>
    %17 = tpu.concatenate %16, %11 in 1 : vector<2x15x128xf32>, vector<2x1x128xf32> -> vector<2x16x128xf32>
    %18 = tpu.concatenate %15, %13, %17 in 2 : vector<2x16x128xf32>, vector<2x16x128xf32>, vector<2x16x128xf32> -> vector<2x16x384xf32>
    %19 = vector.shape_cast %18 : vector<2x16x384xf32> to vector<32x384xf32>
    %cst_11 = arith.constant dense<0.000000e+00> : vector<32x512xf32>
    %20 = tpu.matmul %19, %0, %cst_11 {dimension_numbers = #tpu.dot_dimension_numbers<[1], [0], [0], [1], [0, 0, 1, 1], [], []>} : vector<32x384xf32>, vector<384x512xf32>, vector<32x512xf32> -> vector<32x512xf32>
    %21 = vector.extract_strided_slice %20 {offsets = [0, 0], sizes = [32, 256], strides = [1, 1]} : vector<32x512xf32> to vector<32x256xf32>
    %22 = vector.broadcast %4 : vector<1x256xf32> to vector<32x256xf32>
    %23 = arith.addf %21, %22 : vector<32x256xf32>
    %24 = vector.shape_cast %23 : vector<32x256xf32> to vector<2x16x256xf32>
    %25 = vector.extract_strided_slice %20 {offsets = [0, 256], sizes = [32, 256], strides = [1, 1]} : vector<32x512xf32> to vector<32x256xf32>
    %26 = vector.broadcast %10 : vector<1x256xf32> to vector<32x256xf32>
    %27 = arith.addf %25, %26 : vector<32x256xf32>
    %28 = vector.shape_cast %27 : vector<32x256xf32> to vector<2x16x256xf32>
    %cst_12 = arith.constant dense<0.000000e+00> : vector<2x256xf32>
    %29 = vector.multi_reduction <add>, %24, %cst_12 [1] : vector<2x16x256xf32> to vector<2x256xf32>
    %30 = arith.mulf %24, %24 : vector<2x16x256xf32>
    %cst_13 = arith.constant dense<0.000000e+00> : vector<2x256xf32>
    %31 = vector.multi_reduction <add>, %30, %cst_13 [1] : vector<2x16x256xf32> to vector<2x256xf32>
    %32 = tpu.concatenate %29, %31 in 0 : vector<2x256xf32>, vector<2x256xf32> -> vector<4x256xf32>
    %cst_14 = arith.constant dense<0.000000e+00> : vector<4x256xf32>
    %33 = tpu.matmul %32, %2, %cst_14 {dimension_numbers = #tpu.dot_dimension_numbers<[1], [0], [0], [1], [0, 0, 1, 1], [], []>} : vector<4x256xf32>, vector<256x256xf32>, vector<4x256xf32> -> vector<4x256xf32>
    %34 = vector.extract_strided_slice %33 {offsets = [0, 0], sizes = [2, 256], strides = [1, 1]} : vector<4x256xf32> to vector<2x256xf32>
    %35 = vector.shape_cast %34 : vector<2x256xf32> to vector<2x1x256xf32>
    %36 = vector.extract_strided_slice %33 {offsets = [2, 0], sizes = [2, 256], strides = [1, 1]} : vector<4x256xf32> to vector<2x256xf32>
    %37 = vector.shape_cast %36 : vector<2x256xf32> to vector<2x1x256xf32>
    %38 = arith.mulf %35, %35 : vector<2x1x256xf32>
    %39 = arith.subf %37, %38 : vector<2x1x256xf32>
    %cst_15 = arith.constant 9.99999974E-6 : f32
    %40 = vector.broadcast %cst_15 : f32 to vector<2x1x256xf32>
    %41 = arith.addf %39, %40 : vector<2x1x256xf32>
    %42 = math.rsqrt %41 : vector<2x1x256xf32>
    %43 = vector.broadcast %35 : vector<2x1x256xf32> to vector<2x16x256xf32>
    %44 = arith.subf %24, %43 : vector<2x16x256xf32>
    %45 = vector.broadcast %42 : vector<2x1x256xf32> to vector<2x16x256xf32>
    %46 = arith.mulf %44, %45 : vector<2x16x256xf32>
    %47 = vector.shape_cast %5 : vector<1x256xf32> to vector<1x1x256xf32>
    %48 = vector.broadcast %47 : vector<1x1x256xf32> to vector<2x16x256xf32>
    %49 = arith.mulf %46, %48 : vector<2x16x256xf32>
    %50 = vector.shape_cast %6 : vector<1x256xf32> to vector<1x1x256xf32>
    %51 = vector.broadcast %50 : vector<1x1x256xf32> to vector<2x16x256xf32>
    %52 = arith.addf %49, %51 : vector<2x16x256xf32>
    %cst_16 = arith.constant 5.000000e-01 : f32
    %53 = vector.broadcast %cst_16 : f32 to vector<2x16x256xf32>
    %54 = arith.mulf %53, %52 : vector<2x16x256xf32>
    %55 = math.tanh %54 : vector<2x16x256xf32>
    %cst_17 = arith.constant 1.000000e+00 : f32
    %56 = vector.broadcast %cst_17 : f32 to vector<2x16x256xf32>
    %57 = arith.addf %55, %56 : vector<2x16x256xf32>
    %cst_18 = arith.constant 5.000000e-01 : f32
    %58 = vector.broadcast %cst_18 : f32 to vector<2x16x256xf32>
    %59 = arith.mulf %58, %57 : vector<2x16x256xf32>
    %60 = arith.mulf %52, %59 : vector<2x16x256xf32>
    %61 = vector.extract_strided_slice %60 {offsets = [0, 0, 0], sizes = [2, 15, 256], strides = [1, 1, 1]} : vector<2x16x256xf32> to vector<2x15x256xf32>
    %62 = tpu.concatenate %12, %61 in 1 : vector<2x1x256xf32>, vector<2x15x256xf32> -> vector<2x16x256xf32>
    %63 = vector.extract_strided_slice %60 {offsets = [0, 1, 0], sizes = [2, 15, 256], strides = [1, 1, 1]} : vector<2x16x256xf32> to vector<2x15x256xf32>
    %64 = tpu.concatenate %63, %12 in 1 : vector<2x15x256xf32>, vector<2x1x256xf32> -> vector<2x16x256xf32>
    %65 = tpu.concatenate %62, %60, %64 in 2 : vector<2x16x256xf32>, vector<2x16x256xf32>, vector<2x16x256xf32> -> vector<2x16x768xf32>
    %66 = vector.shape_cast %65 : vector<2x16x768xf32> to vector<32x768xf32>
    %cst_19 = arith.constant dense<0.000000e+00> : vector<32x256xf32>
    %67 = tpu.matmul %66, %1, %cst_19 {dimension_numbers = #tpu.dot_dimension_numbers<[1], [0], [0], [1], [0, 0, 1, 1], [], []>} : vector<32x768xf32>, vector<768x256xf32>, vector<32x256xf32> -> vector<32x256xf32>
    %68 = vector.broadcast %7 : vector<1x256xf32> to vector<32x256xf32>
    %69 = arith.addf %67, %68 : vector<32x256xf32>
    %70 = vector.shape_cast %69 : vector<32x256xf32> to vector<2x16x256xf32>
    %cst_20 = arith.constant dense<0.000000e+00> : vector<2x256xf32>
    %71 = vector.multi_reduction <add>, %70, %cst_20 [1] : vector<2x16x256xf32> to vector<2x256xf32>
    %72 = arith.mulf %70, %70 : vector<2x16x256xf32>
    %cst_21 = arith.constant dense<0.000000e+00> : vector<2x256xf32>
    %73 = vector.multi_reduction <add>, %72, %cst_21 [1] : vector<2x16x256xf32> to vector<2x256xf32>
    %74 = tpu.concatenate %71, %73 in 0 : vector<2x256xf32>, vector<2x256xf32> -> vector<4x256xf32>
    %cst_22 = arith.constant dense<0.000000e+00> : vector<4x256xf32>
    %75 = tpu.matmul %74, %2, %cst_22 {dimension_numbers = #tpu.dot_dimension_numbers<[1], [0], [0], [1], [0, 0, 1, 1], [], []>} : vector<4x256xf32>, vector<256x256xf32>, vector<4x256xf32> -> vector<4x256xf32>
    %76 = vector.extract_strided_slice %75 {offsets = [0, 0], sizes = [2, 256], strides = [1, 1]} : vector<4x256xf32> to vector<2x256xf32>
    %77 = vector.shape_cast %76 : vector<2x256xf32> to vector<2x1x256xf32>
    %78 = vector.extract_strided_slice %75 {offsets = [2, 0], sizes = [2, 256], strides = [1, 1]} : vector<4x256xf32> to vector<2x256xf32>
    %79 = vector.shape_cast %78 : vector<2x256xf32> to vector<2x1x256xf32>
    %80 = arith.mulf %77, %77 : vector<2x1x256xf32>
    %81 = arith.subf %79, %80 : vector<2x1x256xf32>
    %cst_23 = arith.constant 9.99999974E-6 : f32
    %82 = vector.broadcast %cst_23 : f32 to vector<2x1x256xf32>
    %83 = arith.addf %81, %82 : vector<2x1x256xf32>
    %84 = math.rsqrt %83 : vector<2x1x256xf32>
    %85 = vector.broadcast %77 : vector<2x1x256xf32> to vector<2x16x256xf32>
    %86 = arith.subf %70, %85 : vector<2x16x256xf32>
    %87 = vector.broadcast %84 : vector<2x1x256xf32> to vector<2x16x256xf32>
    %88 = arith.mulf %86, %87 : vector<2x16x256xf32>
    %89 = vector.shape_cast %8 : vector<1x256xf32> to vector<1x1x256xf32>
    %90 = vector.broadcast %89 : vector<1x1x256xf32> to vector<2x16x256xf32>
    %91 = arith.mulf %88, %90 : vector<2x16x256xf32>
    %92 = vector.shape_cast %9 : vector<1x256xf32> to vector<1x1x256xf32>
    %93 = vector.broadcast %92 : vector<1x1x256xf32> to vector<2x16x256xf32>
    %94 = arith.addf %91, %93 : vector<2x16x256xf32>
    %cst_24 = arith.constant 5.000000e-01 : f32
    %95 = vector.broadcast %cst_24 : f32 to vector<2x16x256xf32>
    %96 = arith.mulf %95, %94 : vector<2x16x256xf32>
    %97 = math.tanh %96 : vector<2x16x256xf32>
    %cst_25 = arith.constant 1.000000e+00 : f32
    %98 = vector.broadcast %cst_25 : f32 to vector<2x16x256xf32>
    %99 = arith.addf %97, %98 : vector<2x16x256xf32>
    %cst_26 = arith.constant 5.000000e-01 : f32
    %100 = vector.broadcast %cst_26 : f32 to vector<2x16x256xf32>
    %101 = arith.mulf %100, %99 : vector<2x16x256xf32>
    %102 = arith.mulf %94, %101 : vector<2x16x256xf32>
    %103 = arith.addf %102, %28 : vector<2x16x256xf32>
    %c0_27 = arith.constant 0 : index
    %c0_28 = arith.constant 0 : index
    %c0_29 = arith.constant 0 : index
    %104 = vector.load %arg6[%c0_27, %c0_28, %c0_29] : memref<2x16x256xf32, #tpu.memory_space<vmem>>, vector<2x16x256xf32>
    tpu.vector_store %arg6[%c0_27, %c0_28, %c0_29], %103 {strides = array<i32>} : memref<2x16x256xf32, #tpu.memory_space<vmem>>, vector<2x16x256xf32>,
    return
  }
  func.func @transform_0(%arg0: i32) -> (i32, i32, i32) {
    %c0_i32 = arith.constant 0 : i32
    %c0_i32_0 = arith.constant 0 : i32
    %c0_i32_1 = arith.constant 0 : i32
    return %arg0, %c0_i32, %c0_i32_0 : i32, i32, i32
  }
  func.func @transform_1(%arg0: i32) -> (i32, i32) {
    %c0_i32 = arith.constant 0 : i32
    %c0_i32_0 = arith.constant 0 : i32
    %c0_i32_1 = arith.constant 0 : i32
    return %c0_i32, %c0_i32_0 : i32, i32
  }
  func.func @transform_2(%arg0: i32) -> (i32, i32) {
    %c0_i32 = arith.constant 0 : i32
    %c0_i32_0 = arith.constant 0 : i32
    %c0_i32_1 = arith.constant 0 : i32
    return %c0_i32, %c0_i32_0 : i32, i32
  }
  func.func @transform_3(%arg0: i32) -> (i32, i32) {
    %c0_i32 = arith.constant 0 : i32
    %c0_i32_0 = arith.constant 0 : i32
    %c0_i32_1 = arith.constant 0 : i32
    return %c0_i32, %c0_i32_0 : i32, i32
  }
  func.func @transform_4(%arg0: i32) -> (i32, i32) {
    %c0_i32 = arith.constant 0 : i32
    %c0_i32_0 = arith.constant 0 : i32
    %c0_i32_1 = arith.constant 0 : i32
    return %c0_i32, %c0_i32_0 : i32, i32
  }
  func.func @transform_5(%arg0: i32) -> (i32, i32, i32) {
    %c0_i32 = arith.constant 0 : i32
    %c0_i32_0 = arith.constant 0 : i32
    %c0_i32_1 = arith.constant 0 : i32
    return %arg0, %c0_i32, %c0_i32_0 : i32, i32, i32
  }
}

</mosaic_0001>

<bundles_post_ra>
// kernel: tpu_custom_call.1
= control target key start
LH: loop header
LB: loop body
LE: loop exit
PB: predicated region body
PF: predicated region fallthrough
CT: control target
= control target key end

     0   :  { %10 = vsyncpa [#allocation3], 0  ;;  %s3386_s0 = inlined_call_operand.hbm [shape: f32[2,16,128], index: 0, kind: input, shape index: {}]   ;;  %s3387_s1 = inlined_call_operand.hbm [shape: f32[384,512], index: 1, kind: input, shape index: {}]   ;;  %s3388_s2 = inlined_call_operand.hbm [shape: f32[768,256], index: 2, kind: input, shape index: {}]   ;;  %s3389_s3 = inlined_call_operand.hbm [shape: f32[256,256], index: 3, kind: input, shape index: {}]   ;;  %s3390_s4 = inlined_call_operand.hbm [shape: f32[8,256], index: 4, kind: input, shape index: {}]   ;;  %s3391_s5 = inlined_call_operand.hbm [shape: f32[2,16,256], index: 5, kind: output, shape index: {}]  }
   0x1   :  { %11 = vsyncpa [#allocation6], 0 }
   0x2   :  { %12 = vsyncpa [#allocation9], 0 }
   0x3   :  { %13 = vsyncpa [#allocation4], 0  ;;  %s2744_s18 = smov [#allocation5]   ;;  %s2604_s22 = scalar_lea.hbm %s3387_s1, 24576 }
   0x4   :  { %s31_s19 = sshll.u32 %s2744_s18, 4  ;;  %p2605_p0 = scmp.ne.s32.totalorder %s3387_s1, %s2604_s22  ;;  %s32_s19 = int_to_ptr.vmem [resolvable:$true] %s31_s19 }
   0x5   :  { %p2608_p1 = scmp.lt.u32.totalorder %s2604_s22, %s3387_s1 }
   0x7   :  { %p2610_p2 = pnand %p2608_p1, %p2605_p0 }
   0x9   :  { %2613 = shalt.err (!%p2610_p2)
}
   0xa   :  { %s2614_s27 = scalar_lea.vmem %s32_s19, 24576  ;;  %p2619_p4 = scmp.lt.s32.totalorder %s32_s19, %s32_s19 }
   0xb   :  { %p2615_p3 = scmp.ne.s32.totalorder %s32_s19, %s2614_s27  ;;  %p2620_p5 = scmp.lt.s32.totalorder %s2614_s27, %s2614_s27 }
   0xd   :  { %p2621_p6 = por %p2620_p5, %p2619_p4 }
   0xf   :  { %p2622_p7 = pnand %p2621_p6, %p2615_p3 }
  0x11   :  { %2625 = shalt.err (!%p2622_p7)
}
  0x12   :  { %s2745_s28 = smov 512   ;;  %s2746_s29 = smov 32  }
  0x13   :  { %37 = dma.hbm_to_vmem [thread:$0]  %s3387_s1, 24576, %s32_s19, [#allocation6], %s2745_s28, %s2745_s28, %s2746_s29  }
  0x14   :  { %s2747_s7 = smov [#allocation8]   ;;  %s2748_s9 = smov [#allocation2]  }
  0x15   :  { %s55_s8 = sshll.u32 %s2747_s7, 4  ;;  %s19_s10 = sshll.u32 %s2748_s9, 4  ;;  %s56_s8 = int_to_ptr.vmem [resolvable:$true] %s55_s8  ;;  %s20_s10 = int_to_ptr.vmem [resolvable:$true] %s19_s10 }
  0x16   :  { %s2626_s13 = scalar_lea.hbm %s3389_s3, 8192 }
  0x17   :  { %p2627_p8 = scmp.ne.s32.totalorder %s3389_s3, %s2626_s13  ;;  %p2630_p9 = scmp.lt.u32.totalorder %s2626_s13, %s3389_s3 }
  0x19   :  { %p2632_p10 = pnand %p2630_p9, %p2627_p8 }
  0x1b   :  { %2635 = shalt.err (!%p2632_p10)
}
  0x1c   :  { %s2636_s1 = scalar_lea.vmem %s56_s8, 8192  ;;  %p2641_p12 = scmp.lt.s32.totalorder %s56_s8, %s56_s8 }
  0x1d   :  { %p2637_p11 = scmp.ne.s32.totalorder %s56_s8, %s2636_s1  ;;  %p2642_p13 = scmp.lt.s32.totalorder %s2636_s1, %s2636_s1 }
  0x1f   :  { %p2643_p0 = por %p2642_p13, %p2641_p12 }
  0x21   :  { %p2644_p1 = pnand %p2643_p0, %p2637_p11 }
  0x23   :  { %2647 = shalt.err (!%p2644_p1)
}
  0x24   :  { %s2749_s18 = smov 256   ;;  %s2750_s19 = smov 16  }
  0x25   :  { %61 = dma.hbm_to_vmem [thread:$0]  %s3389_s3, 8192, %s56_s8, [#allocation9], %s2749_s18, %s2749_s18, %s2750_s19  }
  0x26   :  { %s2648_s24 = scalar_lea.hbm %s3386_s0, 512 }
  0x27   :  { %p2649_p2 = scmp.ne.s32.totalorder %s3386_s0, %s2648_s24  ;;  %p2652_p3 = scmp.lt.u32.totalorder %s2648_s24, %s3386_s0 }
  0x29   :  { %p2654_p4 = pnand %p2652_p3, %p2649_p2 }
  0x2b   :  { %2657 = shalt.err (!%p2654_p4)
}
  0x2c   :  { %s2658_s29 = scalar_lea.vmem %s20_s10, 512  ;;  %p2663_p6 = scmp.lt.s32.totalorder %s20_s10, %s20_s10 }
  0x2d   :  { %p2659_p5 = scmp.ne.s32.totalorder %s20_s10, %s2658_s29  ;;  %p2664_p7 = scmp.lt.s32.totalorder %s2658_s29, %s2658_s29 }
  0x2f   :  { %p2665_p8 = por %p2664_p7, %p2663_p6 }
  0x31   :  { %p2666_p9 = pnand %p2665_p8, %p2659_p5 }
  0x33   :  { %2669 = shalt.err (!%p2666_p9)
}
  0x34   :  { %s2751_s3 = smov 128   ;;  %s2752_s30 = smov 8  }
  0x35   :  { %25 = dma.hbm_to_vmem [thread:$0]  %s3386_s0, 512, %s20_s10, [#allocation3], %s2751_s3, %s2751_s3, %s2752_s30  }
  0x36   :  { %s2753_s8 = smov [#allocation7]   ;;  %s2754_s11 = smov [#allocation10]  }
  0x37   :  { %s43_s9 = sshll.u32 %s2753_s8, 4  ;;  %s68_s12 = sshll.u32 %s2754_s11, 4  ;;  %s44_s9 = int_to_ptr.vmem [resolvable:$true] %s43_s9  ;;  %s69_s12 = int_to_ptr.vmem [resolvable:$true] %s68_s12 }
  0x38   :  { %s2670_s15 = scalar_lea.hbm %s3388_s2, 24576 }
  0x39   :  { %p2671_p10 = scmp.ne.s32.totalorder %s3388_s2, %s2670_s15  ;;  %p2674_p11 = scmp.lt.u32.totalorder %s2670_s15, %s3388_s2 }
  0x3b   :  { %p2676_p12 = pnand %p2674_p11, %p2671_p10 }
  0x3d   :  { %2679 = shalt.err (!%p2676_p12)
}
  0x3e   :  { %s2680_s0 = scalar_lea.vmem %s44_s9, 24576  ;;  %p2685_p0 = scmp.lt.s32.totalorder %s44_s9, %s44_s9 }
  0x3f   :  { %p2681_p13 = scmp.ne.s32.totalorder %s44_s9, %s2680_s0  ;;  %p2686_p1 = scmp.lt.s32.totalorder %s2680_s0, %s2680_s0 }
  0x41   :  { %p2687_p2 = por %p2686_p1, %p2685_p0 }
  0x43   :  { %p2688_p3 = pnand %p2687_p2, %p2681_p13 }
  0x45   :  { %2691 = shalt.err (!%p2688_p3)
}
  0x46   :  { %49 = dma.hbm_to_vmem [thread:$0]  %s3388_s2, 24576, %s44_s9, [#allocation6], %s2749_s18, %s2749_s18, %s2750_s19  }
  0x47   :  { %s2692_s24 = scalar_lea.hbm %s3390_s4, 256 }
  0x48   :  { %p2693_p4 = scmp.ne.s32.totalorder %s3390_s4, %s2692_s24  ;;  %p2696_p5 = scmp.lt.u32.totalorder %s2692_s24, %s3390_s4 }
  0x4a   :  { %p2698_p6 = pnand %p2696_p5, %p2693_p4 }
  0x4c   :  { %2701 = shalt.err (!%p2698_p6)
}
  0x4d   :  { %s2702_s29 = scalar_lea.vmem %s69_s12, 256  ;;  %p2707_p8 = scmp.lt.s32.totalorder %s69_s12, %s69_s12 }
  0x4e   :  { %p2703_p7 = scmp.ne.s32.totalorder %s69_s12, %s2702_s29  ;;  %p2708_p9 = scmp.lt.s32.totalorder %s2702_s29, %s2702_s29 }
  0x50   :  { %p2709_p10 = por %p2708_p9, %p2707_p8 }
  0x52   :  { %p2710_p11 = pnand %p2709_p10, %p2703_p7 }
  0x54   :  { %2713 = shalt.err (!%p2710_p11)
}
  0x55   :  { %71 = dma.hbm_to_vmem [thread:$0]  %s3390_s4, 256, %s69_s12, [#allocation9]  }
  0x56   :  { %2736 = dma.done.wait [#allocation3], 512  }
  0x57   :  { %2737 = vsyncadd [#allocation3], 4294966784 }
  0x58   :  { %2738 = dma.done.wait [#allocation6], 49152  }
  0x59   :  { %2739 = vsyncadd [#allocation6], 4294918144 }
  0x5a   :  { %2740 = dma.done.wait [#allocation9], 8448  }
  0x5b   :  { %2741 = vsyncadd [#allocation9], 4294958848  ;;  %v88_v0 = vld [vmem:[#allocation5 + $0x8] sm:$0xff]  ;;  %v87_v2 = vld [vmem:[#allocation5] sm:$0xff]  ;;  %vm545_vm0 = vcmask 1040384   ;;  %vm558_vm2 = vcmask 1046528  }
  0x5c   :  { %v92_v1 = vld [vmem:[#allocation5 + $0x28] sm:$0xff]  ;;  %v91_v4 = vld [vmem:[#allocation5 + $0x20] sm:$0xff]  ;;  %v90_v62 = vld [vmem:[#allocation5 + $0x18] sm:$0xff]  ;;  %vm1036_vm3 = vcmask 1043459   ;;  %vm1027_vm4 = vcmask 1041409   ;;  %vm1041_vm5 = vcmask 1041408  }
  0x5d   :  { %v1996_v3 = vpack.c.bf16 %v92_v1, %v88_v0  ;;  %v96_v5 = vld [vmem:[#allocation5 + $0x48] sm:$0xff]  ;;  %v1998_v7 = vpack.c.bf16 %v91_v4, %v87_v2  ;;  %v95_v9 = vld [vmem:[#allocation5 + $0x40] sm:$0xff]  ;;  %v94_v63 = vld [vmem:[#allocation5 + $0x38] sm:$0xff]  ;;  %s2757_s4 = smov [#allocation11]  }
  0x5e   :  { %v100_v6 = vld [vmem:[#allocation5 + $0x68] sm:$0xff]  ;;  %v99_v10 = vld [vmem:[#allocation5 + $0x60] sm:$0xff]  ;;  %v2092_v0 = vpack.c.bf16 %v94_v63, %v90_v62  ;;  %v89_v1 = vld [vmem:[#allocation5 + $0x10] sm:$0xff]  ;;  %s1958_s30 = sshll.u32 %s2757_s4, 4  ;;  %s1959_s30 = int_to_ptr.vmem [resolvable:$true] %s1958_s30 }
  0x5f   :  { %v2000_v8 = vpack.c.bf16 %v100_v6, %v96_v5  ;;  %v104_v11 = vld [vmem:[#allocation5 + $0x88] sm:$0xff]  ;;  %1997 = vmatprep.subr.bf16.mxu0 %v1996_v3  ;;  %v2002_v13 = vpack.c.bf16 %v99_v10, %v95_v9  ;;  %v103_v15 = vld [vmem:[#allocation5 + $0x80] sm:$0xff]  ;;  %v93_v2 = vld [vmem:[#allocation5 + $0x30] sm:$0xff]  ;;  %s2714_s6 = scalar_lea.vmem %s1959_s30, 1024  ;;  %p2719_p13 = scmp.lt.s32.totalorder %s1959_s30, %s1959_s30 }
  0x60   :  { %v108_v12 = vld [vmem:[#allocation5 + $0xa8] sm:$0xff]  ;;  %1999 = vmatpush1.bf16.msra.mxu0 %v1998_v7  ;;  %v107_v16 = vld [vmem:[#allocation5 + $0xa0] sm:$0xff]  ;;  %v98_v3 = vld [vmem:[#allocation5 + $0x58] sm:$0xff]  ;;  %v2094_v4 = vpack.c.bf16 %v93_v2, %v89_v1  ;;  %2093 = vmatprep.subr.bf16.mxu1 %v2092_v0  ;;  %p2715_p12 = scmp.ne.s32.totalorder %s1959_s30, %s2714_s6  ;;  %p2720_p0 = scmp.lt.s32.totalorder %s2714_s6, %s2714_s6 }
  0x61   :  { %2001 = vmatprep.subr.bf16.mxu0 %v2000_v8  ;;  %v2004_v14 = vpack.c.bf16 %v108_v12, %v104_v11  ;;  %v112_v17 = vld [vmem:[#allocation5 + $0xc8] sm:$0xff]  ;;  %v2006_v19 = vpack.c.bf16 %v107_v16, %v103_v15  ;;  %v111_v21 = vld [vmem:[#allocation5 + $0xc0] sm:$0xff]  ;;  %v102_v5 = vld [vmem:[#allocation5 + $0x78] sm:$0xff] }
  0x62   :  { %v116_v18 = vld [vmem:[#allocation5 + $0xe8] sm:$0xff]  ;;  %v115_v22 = vld [vmem:[#allocation5 + $0xe0] sm:$0xff]  ;;  %v97_v6 = vld [vmem:[#allocation5 + $0x50] sm:$0xff]  ;;  %v2096_v9 = vpack.c.bf16 %v102_v5, %v98_v3  ;;  %2095 = vmatpush1.bf16.msra.mxu1 %v2094_v4  ;;  %p2721_p1 = por %p2720_p0, %p2719_p13 }
  0x63   :  { %v2008_v20 = vpack.c.bf16 %v116_v18, %v112_v17  ;;  %v120_v23 = vld [vmem:[#allocation5 + $0x108] sm:$0xff]  ;;  %v2010_v25 = vpack.c.bf16 %v115_v22, %v111_v21  ;;  %v119_v27 = vld [vmem:[#allocation5 + $0x100] sm:$0xff]  ;;  %v101_v7 = vld [vmem:[#allocation5 + $0x70] sm:$0xff] }
  0x64   :  { %2003 = vmatpush1.bf16.msra.mxu0 %v2002_v13  ;;  %v124_v24 = vld [vmem:[#allocation5 + $0x128] sm:$0xff]  ;;  %v123_v28 = vld [vmem:[#allocation5 + $0x120] sm:$0xff]  ;;  %v106_v10 = vld [vmem:[#allocation5 + $0x98] sm:$0xff]  ;;  %v2098_v16 = vpack.c.bf16 %v101_v7, %v97_v6  ;;  %2097 = vmatprep.subr.bf16.mxu1 %v2096_v9  ;;  %p2722_p2 = pnand %p2721_p1, %p2715_p12 }
  0x65   :  { %2005 = vmatprep.subr.bf16.mxu0 %v2004_v14  ;;  %v2012_v26 = vpack.c.bf16 %v124_v24, %v120_v23  ;;  %v128_v29 = vld [vmem:[#allocation5 + $0x148] sm:$0xff]  ;;  %v2014_v31 = vpack.c.bf16 %v123_v28, %v119_v27  ;;  %v127_v33 = vld [vmem:[#allocation5 + $0x140] sm:$0xff]  ;;  %v110_v11 = vld [vmem:[#allocation5 + $0xb8] sm:$0xff] }
  0x66   :  { %v132_v30 = vld [vmem:[#allocation5 + $0x168] sm:$0xff]  ;;  %v131_v34 = vld [vmem:[#allocation5 + $0x160] sm:$0xff]  ;;  %v2100_v18 = vpack.c.bf16 %v110_v11, %v106_v10  ;;  %v114_v21 = vld [vmem:[#allocation5 + $0xd8] sm:$0xff]  ;;  %2099 = vmatpush1.bf16.msra.mxu1 %v2098_v16 }
  0x67   :  { %v2016_v32 = vpack.c.bf16 %v132_v30, %v128_v29  ;;  %v136_v35 = vld [vmem:[#allocation5 + $0x188] sm:$0xff]  ;;  %v2018_v37 = vpack.c.bf16 %v131_v34, %v127_v33  ;;  %v135_v39 = vld [vmem:[#allocation5 + $0x180] sm:$0xff]  ;;  %v118_v22 = vld [vmem:[#allocation5 + $0xf8] sm:$0xff] }
  0x68   :  { %2007 = vmatpush1.bf16.msra.mxu0 %v2006_v19  ;;  %v140_v36 = vld [vmem:[#allocation5 + $0x1a8] sm:$0xff]  ;;  %v139_v40 = vld [vmem:[#allocation5 + $0x1a0] sm:$0xff]  ;;  %v105_v19 = vld [vmem:[#allocation5 + $0x90] sm:$0xff]  ;;  %2101 = vmatprep.subr.bf16.mxu1 %v2100_v18  ;;  %v2104_v30 = vpack.c.bf16 %v118_v22, %v114_v21 }
  0x69   :  { %2009 = vmatprep.subr.bf16.mxu0 %v2008_v20  ;;  %v2020_v38 = vpack.c.bf16 %v140_v36, %v136_v35  ;;  %v2854_v41 = vld [vmem:[#allocation2] sm:$0xff]  ;;  %v144_v42 = vld [vmem:[#allocation5 + $0x1c8] sm:$0xff]  ;;  %v2022_v44 = vpack.c.bf16 %v139_v40, %v135_v39  ;;  %v109_v20 = vld [vmem:[#allocation5 + $0xb0] sm:$0xff] }
  0x6a   :  { %v148_v43 = vld [vmem:[#allocation5 + $0x1e8] sm:$0xff]  ;;  %635 = vmatprep.mubr.f32.mxu0 %v2854_v41  ;;  %813 = vmatprep.mubr.f32.mxu1 %v2854_v41  ;;  %v143_v46 = vld [vmem:[#allocation5 + $0x1c0] sm:$0xff]  ;;  %v2102_v28 = vpack.c.bf16 %v109_v20, %v105_v19  ;;  %v122_v33 = vld [vmem:[#allocation5 + $0x118] sm:$0xff] }
  0x6b   :  { %v2024_v45 = vpack.c.bf16 %v148_v43, %v144_v42  ;;  %v147_v47 = vld [vmem:[#allocation5 + $0x1e0] sm:$0xff]  ;;  %v152_v48 = vld [vmem:[#allocation5 + $0x208] sm:$0xff]  ;;  %v126_v34 = vld [vmem:[#allocation5 + $0x138] sm:$0xff] }
  0x6c   :  { %2011 = vmatpush1.bf16.msra.mxu0 %v2010_v25  ;;  %v156_v49 = vld [vmem:[#allocation5 + $0x228] sm:$0xff]  ;;  %v2026_v50 = vpack.c.bf16 %v147_v47, %v143_v46  ;;  %v151_v52 = vld [vmem:[#allocation5 + $0x200] sm:$0xff]  ;;  %2103 = vmatpush1.bf16.msra.mxu1 %v2102_v28  ;;  %v2108_v43 = vpack.c.bf16 %v126_v34, %v122_v33  ;;  %v130_v46 = vld [vmem:[#allocation5 + $0x158] sm:$0xff]  ;;  %v3419_v34 = vmov 0 }
  0x6d   :  { %2013 = vmatprep.subr.bf16.mxu0 %v2012_v26  ;;  %v2028_v51 = vpack.c.bf16 %v156_v49, %v152_v48  ;;  %v155_v53 = vld [vmem:[#allocation5 + $0x220] sm:$0xff]  ;;  %v160_v54 = vld [vmem:[#allocation5 + $0x248] sm:$0xff]  ;;  %2105 = vmatprep.subr.bf16.mxu1 %v2104_v30  ;;  %v134_v47 = vld [vmem:[#allocation5 + $0x178] sm:$0xff] }
  0x6e   :  { %v164_v55 = vld [vmem:[#allocation5 + $0x268] sm:$0xff]  ;;  %v2030_v56 = vpack.c.bf16 %v155_v53, %v151_v52  ;;  %v159_v57 = vld [vmem:[#allocation5 + $0x240] sm:$0xff]  ;;  %v137_v4 = vld [vmem:[#allocation5 + $0x190] sm:$0xff] }
  0x6f   :  { %v163_v58 = vld [vmem:[#allocation5 + $0x260] sm:$0xff]  ;;  %v168_v59 = vld [vmem:[#allocation5 + $0x288] sm:$0xff]  ;;  %v2032_v60 = vpack.c.bf16 %v164_v55, %v160_v54  ;;  %v2112_v55 = vpack.c.bf16 %v134_v47, %v130_v46  ;;  %v141_v5 = vld [vmem:[#allocation5 + $0x1b0] sm:$0xff] }
  0x70   :  { %2015 = vmatpush1.bf16.msra.mxu0 %v2014_v31  ;;  %v172_v61 = vld [vmem:[#allocation5 + $0x2a8] sm:$0xff]  ;;  %v2034_v8 = vpack.c.bf16 %v163_v58, %v159_v57  ;;  %v167_v13 = vld [vmem:[#allocation5 + $0x280] sm:$0xff]  ;;  %v113_v31 = vld [vmem:[#allocation5 + $0xd0] sm:$0xff] }
  0x71   :  { %2017 = vmatprep.subr.bf16.mxu0 %v2016_v32  ;;  %v2036_v12 = vpack.c.bf16 %v172_v61, %v168_v59  ;;  %v171_v14 = vld [vmem:[#allocation5 + $0x2a0] sm:$0xff]  ;;  %v176_v15 = vld [vmem:[#allocation5 + $0x2c8] sm:$0xff]  ;;  %v117_v32 = vld [vmem:[#allocation5 + $0xf0] sm:$0xff] }
  0x72   :  { %v180_v17 = vld [vmem:[#allocation5 + $0x2e8] sm:$0xff]  ;;  %v2038_v23 = vpack.c.bf16 %v171_v14, %v167_v13  ;;  %v175_v25 = vld [vmem:[#allocation5 + $0x2c0] sm:$0xff]  ;;  %v2106_v40 = vpack.c.bf16 %v117_v32, %v113_v31  ;;  %v133_v57 = vld [vmem:[#allocation5 + $0x170] sm:$0xff]  ;;  %v2118_v13 = vpack.c.bf16 %v141_v5, %v137_v4  ;;  %v2861_v31 = vrot.slane %v2854_v41, 7 }
  0x73   :  { %v2040_v24 = vpack.c.bf16 %v180_v17, %v176_v15  ;;  %v179_v26 = vld [vmem:[#allocation5 + $0x2e0] sm:$0xff]  ;;  %v184_v27 = vld [vmem:[#allocation5 + $0x308] sm:$0xff]  ;;  %v138_v58 = vld [vmem:[#allocation5 + $0x198] sm:$0xff] }
  0x74   :  { %2019 = vmatpush1.bf16.msra.mxu0 %v2018_v37  ;;  %v188_v29 = vld [vmem:[#allocation5 + $0x328] sm:$0xff]  ;;  %v2042_v35 = vpack.c.bf16 %v179_v26, %v175_v25  ;;  %v183_v37 = vld [vmem:[#allocation5 + $0x300] sm:$0xff]  ;;  %2107 = vmatpush1.bf16.msra.mxu1 %v2106_v40  ;;  %v142_v59 = vld [vmem:[#allocation5 + $0x1b8] sm:$0xff] }
  0x75   :  { %2021 = vmatprep.subr.bf16.mxu0 %v2020_v38  ;;  %v2044_v36 = vpack.c.bf16 %v188_v29, %v184_v27  ;;  %v187_v38 = vld [vmem:[#allocation5 + $0x320] sm:$0xff]  ;;  %v192_v39 = vld [vmem:[#allocation5 + $0x348] sm:$0xff]  ;;  %2109 = vmatprep.subr.bf16.mxu1 %v2108_v43  ;;  %v2116_v3 = vpack.c.bf16 %v142_v59, %v138_v58  ;;  %v146_v6 = vld [vmem:[#allocation5 + $0x1d8] sm:$0xff] }
  0x76   :  { %v196_v42 = vld [vmem:[#allocation5 + $0x368] sm:$0xff]  ;;  %v2046_v48 = vpack.c.bf16 %v187_v38, %v183_v37  ;;  %v199_v62 = vld [vmem:[#allocation5 + $0x380] sm:$0xff]  ;;  %v150_v7 = vld [vmem:[#allocation5 + $0x1f8] sm:$0xff] }
  0x77   :  { %v2048_v49 = vpack.c.bf16 %v196_v42, %v192_v39  ;;  %v200_v52 = vld [vmem:[#allocation5 + $0x388] sm:$0xff]  ;;  %v203_v63 = vld [vmem:[#allocation5 + $0x3a0] sm:$0xff]  ;;  %v2120_v15 = vpack.c.bf16 %v150_v7, %v146_v6  ;;  %v145_v16 = vld [vmem:[#allocation5 + $0x1d0] sm:$0xff] }
  0x78   :  { %2023 = vmatpush1.bf16.msra.mxu0 %v2022_v44  ;;  %v121_v44 = vld [vmem:[#allocation5 + $0x110] sm:$0xff]  ;;  %v204_v54 = vld [vmem:[#allocation5 + $0x3a8] sm:$0xff]  ;;  %v207_v10 = vld [vmem:[#allocation5 + $0x3c0] sm:$0xff] }
  0x79   :  { %2025 = vmatprep.subr.bf16.mxu0 %v2024_v45  ;;  %v125_v45 = vld [vmem:[#allocation5 + $0x130] sm:$0xff]  ;;  %v2052_v61 = vpack.c.bf16 %v204_v54, %v200_v52  ;;  %v208_v0 = vld [vmem:[#allocation5 + $0x3c8] sm:$0xff]  ;;  %v211_v11 = vld [vmem:[#allocation5 + $0x3e0] sm:$0xff] }
  0x7a   :  { %v2110_v53 = vpack.c.bf16 %v125_v45, %v121_v44  ;;  %v212_v2 = vld [vmem:[#allocation5 + $0x3e8] sm:$0xff]  ;;  %v149_v17 = vld [vmem:[#allocation5 + $0x1f0] sm:$0xff]  ;;  %v154_v18 = vld [vmem:[#allocation5 + $0x218] sm:$0xff]  ;;  %v2058_v20 = vpack.c.bf16 %v211_v11, %v207_v10 }
  0x7b   :  { %v2056_v9 = vpack.c.bf16 %v212_v2, %v208_v0  ;;  %v220_v14 = vld [vmem:[#allocation5 + $0x428] sm:$0xff]  ;;  %v158_v19 = vld [vmem:[#allocation5 + $0x238] sm:$0xff]  ;;  %v215_v21 = vld [vmem:[#allocation5 + $0x400] sm:$0xff]  ;;  %v2122_v26 = vpack.c.bf16 %v149_v17, %v145_v16 }
  0x7c   :  { %2027 = vmatpush1.bf16.msra.mxu0 %v2026_v50  ;;  %v191_v50 = vld [vmem:[#allocation5 + $0x340] sm:$0xff]  ;;  %2111 = vmatpush1.bf16.msra.mxu1 %v2110_v53  ;;  %v2858_v25 = vld [vmem:[#allocation2 + $0x8] sm:$0xff]  ;;  %v2124_v28 = vpack.c.bf16 %v158_v19, %v154_v18  ;;  %v153_v29 = vld [vmem:[#allocation5 + $0x210] sm:$0xff] }
  0x7d   :  { %2029 = vmatprep.subr.bf16.mxu0 %v2028_v51  ;;  %v195_v51 = vld [vmem:[#allocation5 + $0x360] sm:$0xff]  ;;  %2113 = vmatprep.subr.bf16.mxu1 %v2112_v55  ;;  %v228_v27 = vld [vmem:[#allocation5 + $0x468] sm:$0xff]  ;;  %v157_v30 = vld [vmem:[#allocation5 + $0x230] sm:$0xff] }
  0x7e   :  { %v162_v32 = vld [vmem:[#allocation5 + $0x258] sm:$0xff]  ;;  %vm2864_vm1 = vmneg %vm545_vm0  ;;  %v223_v38 = vld [vmem:[#allocation5 + $0x440] sm:$0xff]  ;;  %v2126_v42 = vpack.c.bf16 %v157_v30, %v153_v29  ;;  %v2755_v29 = vmov 0.0  }
  0x7f   :  { %v166_v33 = vld [vmem:[#allocation5 + $0x278] sm:$0xff]  ;;  %v3420_v34 = vsel %vm2864_vm1, 4294967295, %v3419_v34  ;;  %v227_v39 = vld [vmem:[#allocation5 + $0x460] sm:$0xff]  ;;  %v232_v40 = vld [vmem:[#allocation5 + $0x488] sm:$0xff] }
  0x80   :  { %2031 = vmatpush1.bf16.msra.mxu0 %v2030_v56  ;;  %v129_v56 = vld [vmem:[#allocation5 + $0x150] sm:$0xff]  ;;  %3421 = vst [vmem:[#allocation16_spill] sm:$0xff] %v3420_v34  ;;  %v236_v43 = vld [vmem:[#allocation5 + $0x4a8] sm:$0xff]  ;;  %v2128_v44 = vpack.c.bf16 %v166_v33, %v162_v32  ;;  %v170_v47 = vld [vmem:[#allocation5 + $0x298] sm:$0xff] }
  0x81   :  { %2033 = vmatprep.subr.bf16.mxu0 %v2032_v60  ;;  %v2050_v60 = vpack.c.bf16 %v195_v51, %v191_v50  ;;  %v2114_v1 = vpack.c.bf16 %v133_v57, %v129_v56  ;;  %v161_v45 = vld [vmem:[#allocation5 + $0x250] sm:$0xff]  ;;  %v231_v50 = vld [vmem:[#allocation5 + $0x480] sm:$0xff]  ;;  %v2068_v53 = vpack.c.bf16 %v236_v43, %v232_v40  ;;  %v240_v55 = vld [vmem:[#allocation5 + $0x4c8] sm:$0xff] }
  0x82   :  { %v165_v46 = vld [vmem:[#allocation5 + $0x270] sm:$0xff]  ;;  %v235_v54 = vld [vmem:[#allocation5 + $0x4a0] sm:$0xff]  ;;  %v2879_v56 = vld [vmem:[#allocation2 + $0x18] sm:$0xff] }
  0x83   :  { %2115 = vmatpush1.bf16.msra.mxu1 %v2114_v1  ;;  %v2877_v52 = vld [vmem:[#allocation2 + $0x10] sm:$0xff]  ;;  %v2130_v57 = vpack.c.bf16 %v165_v46, %v161_v45  ;;  %v244_v58 = vld [vmem:[#allocation5 + $0x4e8] sm:$0xff]  ;;  %v182_v0 = vld [vmem:[#allocation5 + $0x2f8] sm:$0xff]  ;;  %v2070_v1 = vpack.c.bf16 %v235_v54, %v231_v50  ;;  %v550_v2 = vrot.slane %v2879_v56, 7 }
  0x84   :  { %2035 = vmatpush1.bf16.msra.mxu0 %v2034_v8  ;;  %v2054_v8 = vpack.c.bf16 %v203_v63, %v199_v62  ;;  %2117 = vmatprep.subr.bf16.mxu1 %v2116_v3  ;;  %v2883_v62 = vrot.slane %v2877_v52, 7  ;;  %v178_v63 = vld [vmem:[#allocation5 + $0x2d8] sm:$0xff]  ;;  %v2072_v3 = vpack.c.bf16 %v244_v58, %v240_v55  ;;  %v239_v4 = vld [vmem:[#allocation5 + $0x4c0] sm:$0xff]  ;;  %v248_v6 = vld [vmem:[#allocation5 + $0x508] sm:$0xff] }
  0x85   :  { %2037 = vmatprep.subr.bf16.mxu0 %v2036_v12  ;;  %v216_v12 = vld [vmem:[#allocation5 + $0x408] sm:$0xff]  ;;  %v243_v5 = vld [vmem:[#allocation5 + $0x4e0] sm:$0xff]  ;;  %v177_v10 = vld [vmem:[#allocation5 + $0x2d0] sm:$0xff] }
  0x86   :  { %v2060_v22 = vpack.c.bf16 %v220_v14, %v216_v12  ;;  %v181_v11 = vld [vmem:[#allocation5 + $0x2f0] sm:$0xff]  ;;  %v186_v12 = vld [vmem:[#allocation5 + $0x318] sm:$0xff]  ;;  %v2074_v14 = vpack.c.bf16 %v243_v5, %v239_v4  ;;  %v247_v17 = vld [vmem:[#allocation5 + $0x500] sm:$0xff] }
  0x87   :  { %2119 = vmatpush1.bf16.msra.mxu1 %v2118_v13  ;;  %v190_v13 = vld [vmem:[#allocation5 + $0x338] sm:$0xff]  ;;  %v251_v18 = vld [vmem:[#allocation5 + $0x520] sm:$0xff]  ;;  %v256_v19 = vld [vmem:[#allocation5 + $0x548] sm:$0xff] }
  0x88   :  { %2039 = vmatpush1.bf16.msra.mxu0 %v2038_v23  ;;  %v219_v23 = vld [vmem:[#allocation5 + $0x420] sm:$0xff]  ;;  %2121 = vmatprep.subr.bf16.mxu1 %v2120_v15  ;;  %v2893_v15 = vsel %vm545_vm0, %v2883_v62, %v550_v2  ;;  %v197_v40 = vld [vmem:[#allocation5 + $0x370] sm:$0xff]  ;;  %v206_v43 = vld [vmem:[#allocation5 + $0x3b8] sm:$0xff] }
  0x89   :  { %2041 = vmatprep.subr.bf16.mxu0 %v2040_v24  ;;  %v224_v24 = vld [vmem:[#allocation5 + $0x448] sm:$0xff]  ;;  %v255_v32 = vld [vmem:[#allocation5 + $0x540] sm:$0xff]  ;;  %v201_v54 = vld [vmem:[#allocation5 + $0x390] sm:$0xff] }
  0x8a   :  { %v2064_v37 = vpack.c.bf16 %v228_v27, %v224_v24  ;;  %v189_v24 = vld [vmem:[#allocation5 + $0x330] sm:$0xff]  ;;  %v198_v27 = vld [vmem:[#allocation5 + $0x378] sm:$0xff]  ;;  %v259_v33 = vld [vmem:[#allocation5 + $0x560] sm:$0xff] }
  0x8b   :  { %2123 = vmatpush1.bf16.msra.mxu1 %v2122_v26  ;;  %v194_v26 = vld [vmem:[#allocation5 + $0x358] sm:$0xff]  ;;  %v263_v46 = vld [vmem:[#allocation5 + $0x580] sm:$0xff]  ;;  %v276_v50 = vld [vmem:[#allocation5 + $0x5e8] sm:$0xff] }
  0x8c   :  { %2043 = vmatpush1.bf16.msra.mxu0 %v2042_v35  ;;  %v2062_v35 = vpack.c.bf16 %v219_v23, %v215_v21  ;;  %2125 = vmatprep.subr.bf16.mxu1 %v2124_v28  ;;  %v260_v21 = vld [vmem:[#allocation5 + $0x568] sm:$0xff]  ;;  %v185_v23 = vld [vmem:[#allocation5 + $0x310] sm:$0xff]  ;;  %v2078_v28 = vpack.c.bf16 %v251_v18, %v247_v17  ;;  %v214_v58 = vld [vmem:[#allocation5 + $0x3f8] sm:$0xff] }
  0x8d   :  { %2045 = vmatprep.subr.bf16.mxu0 %v2044_v36  ;;  %v547_v36 = vrot.slane %v2858_v25, 7  ;;  %v2080_v30 = vpack.c.bf16 %v260_v21, %v256_v19  ;;  %v205_v55 = vld [vmem:[#allocation5 + $0x3b0] sm:$0xff]  ;;  %v222_v2 = vld [vmem:[#allocation5 + $0x438] sm:$0xff] }
  0x8e   :  { %v209_v4 = vld [vmem:[#allocation5 + $0x3d0] sm:$0xff]  ;;  %v238_v21 = vld [vmem:[#allocation5 + $0x4b8] sm:$0xff] }
  0x8f   :  { %v2875_v51 = vsel %vm545_vm0, %v2861_v31, %v547_v36  ;;  %2127 = vmatpush1.bf16.msra.mxu1 %v2126_v42  ;;  %v2142_v36 = vpack.c.bf16 %v189_v24, %v185_v23  ;;  %v202_v42 = vld [vmem:[#allocation5 + $0x398] sm:$0xff]  ;;  %v213_v5 = vld [vmem:[#allocation5 + $0x3f0] sm:$0xff]  ;;  %v2909_v23 = vrot.slane %v2879_v56, 1 }
  0x90   :  { %2047 = vmatpush1.bf16.msra.mxu0 %v2046_v48  ;;  %v174_v48 = vld [vmem:[#allocation5 + $0x2b8] sm:$0xff]  ;;  %2129 = vmatprep.subr.bf16.mxu1 %v2128_v44  ;;  %v2082_v44 = vpack.c.bf16 %v259_v33, %v255_v32  ;;  %v225_v18 = vld [vmem:[#allocation5 + $0x450] sm:$0xff] }
  0x91   :  { %2049 = vmatprep.subr.bf16.mxu0 %v2048_v49  ;;  %v2066_v49 = vpack.c.bf16 %v227_v39, %v223_v38  ;;  %v2132_v59 = vpack.c.bf16 %v174_v48, %v170_v47  ;;  %v2144_v38 = vpack.c.bf16 %v198_v27, %v194_v26  ;;  %v193_v39 = vld [vmem:[#allocation5 + $0x350] sm:$0xff]  ;;  %v267_v47 = vld [vmem:[#allocation5 + $0x5a0] sm:$0xff]  ;;  %v272_v48 = vld [vmem:[#allocation5 + $0x5c8] sm:$0xff] }
  0x92   :  { %v229_v19 = vld [vmem:[#allocation5 + $0x470] sm:$0xff]  ;;  %v246_v32 = vld [vmem:[#allocation5 + $0x4f8] sm:$0xff] }
  0x93   :  { %2131 = vmatpush1.bf16.msra.mxu1 %v2130_v57  ;;  %v210_v57 = vld [vmem:[#allocation5 + $0x3d8] sm:$0xff]  ;;  %v2162_v24 = vpack.c.bf16 %v229_v19, %v225_v18  ;;  %v233_v27 = vld [vmem:[#allocation5 + $0x490] sm:$0xff] }
  0x94   :  { %2051 = vmatpush1.bf16.msra.mxu0 %v2050_v60  ;;  %v169_v60 = vld [vmem:[#allocation5 + $0x290] sm:$0xff]  ;;  %2133 = vmatprep.subr.bf16.mxu1 %v2132_v59  ;;  %v2086_v59 = vpack.c.bf16 %v267_v47, %v263_v46  ;;  %v486_v18 = vld [vmem:[#allocation8 + $0x78] sm:$0xff] }
  0x95   :  { %2053 = vmatprep.subr.bf16.mxu0 %v2052_v61  ;;  %v173_v61 = vld [vmem:[#allocation5 + $0x2b0] sm:$0xff] }
  0x96   :  { %v2134_v7 = vpack.c.bf16 %v173_v61, %v169_v60  ;;  %v2088_v60 = vpack.c.bf16 %v276_v50, %v272_v48  ;;  %v271_v61 = vld [vmem:[#allocation5 + $0x5c0] sm:$0xff]  ;;  %v257_v46 = vld [vmem:[#allocation5 + $0x550] sm:$0xff]  ;;  %v266_v48 = vld [vmem:[#allocation5 + $0x598] sm:$0xff] }
  0x97   :  { %v261_v47 = vld [vmem:[#allocation5 + $0x570] sm:$0xff] }
  0x98   :  { %2055 = vmatpush1.bf16.msra.mxu0 %v2054_v8  ;;  %v252_v8 = vld [vmem:[#allocation5 + $0x528] sm:$0xff]  ;;  %2135 = vmatpush1.bf16.msra.mxu1 %v2134_v7  ;;  %v2899_v7 = vrot.slane %v2858_v25, 1 }
  0x99   :  { %2057 = vmatprep.subr.bf16.mxu0 %v2056_v9  ;;  %v2136_v9 = vpack.c.bf16 %v182_v0, %v178_v63  ;;  %v2076_v16 = vpack.c.bf16 %v252_v8, %v248_v6  ;;  %v275_v63 = vld [vmem:[#allocation5 + $0x5e0] sm:$0xff]  ;;  %v218_v0 = vld [vmem:[#allocation5 + $0x418] sm:$0xff]  ;;  %v559_v6 = vrot.slane %v2854_v41, 1 }
  0x9a   :  { %v2090_v8 = vpack.c.bf16 %v275_v63, %v271_v61  ;;  %v472_v61 = vld [vmem:[#allocation8 + $0x8] sm:$0xff]  ;;  %v474_v63 = vld [vmem:[#allocation8 + $0x18] sm:$0xff] }
  0x9b   :  { %2137 = vmatprep.subr.bf16.mxu1 %v2136_v9  ;;  %v2156_v9 = vpack.c.bf16 %v222_v2, %v218_v0  ;;  %v2934_v0 = vpack.c.bf16 %v474_v63, %v472_v61  ;;  %v473_v2 = vld [vmem:[#allocation8 + $0x10] sm:$0xff]  ;;  %v511_v63 = vld [vmem:[#allocation8 + $0x140] sm:$0xff] }
  0x9c   :  { %2059 = vmatpush1.bf16.msra.mxu0 %v2058_v20  ;;  %v2138_v20 = vpack.c.bf16 %v181_v11, %v177_v10  ;;  %v217_v10 = vld [vmem:[#allocation5 + $0x410] sm:$0xff] }
  0x9d   :  { %2061 = vmatprep.subr.bf16.mxu0 %v2060_v22  ;;  %v2140_v22 = vpack.c.bf16 %v190_v13, %v186_v12  ;;  %v221_v11 = vld [vmem:[#allocation5 + $0x430] sm:$0xff]  ;;  %v2154_v12 = vpack.c.bf16 %v213_v5, %v209_v4  ;;  %v226_v13 = vld [vmem:[#allocation5 + $0x458] sm:$0xff] }
  0x9e   :  { %2139 = vmatpush1.bf16.msra.mxu1 %v2138_v20  ;;  %v2158_v41 = vpack.c.bf16 %v221_v11, %v217_v10  ;;  %v234_v20 = vld [vmem:[#allocation5 + $0x498] sm:$0xff]  ;;  %v480_v10 = vld [vmem:[#allocation8 + $0x48] sm:$0xff] }
  0x9f   :  { %1973 = vmatmul.mubr.msk.f32.vlgmr.msra.gmra.mrb[0].mxu0 %vm2864_vm1, %v2861_v31  ;;  %2141 = vmatprep.subr.bf16.mxu1 %v2140_v22  ;;  %v562_v22 = vrot.slane %v2877_v52, 1  ;;  %v2164_v26 = vpack.c.bf16 %v238_v21, %v234_v20  ;;  %v478_v4 = vld [vmem:[#allocation8 + $0x38] sm:$0xff]  ;;  %v483_v20 = vld [vmem:[#allocation8 + $0x60] sm:$0xff]  ;;  %v485_v21 = vld [vmem:[#allocation8 + $0x70] sm:$0xff] }
  0xa0   :  { %2063 = vmatpush1.bf16.msra.mxu0 %v2062_v35  ;;  %641 = vmatprep.mubr.f32.mxu0 %v2858_v25  ;;  %v264_v35 = vld [vmem:[#allocation5 + $0x588] sm:$0xff]  ;;  %v482_v11 = vld [vmem:[#allocation8 + $0x58] sm:$0xff] }
  0xa1   :  { %2065 = vmatprep.subr.bf16.mxu0 %v2064_v37  ;;  %v268_v37 = vld [vmem:[#allocation5 + $0x5a8] sm:$0xff]  ;;  %v2920_v33 = vsel %vm558_vm2, %v562_v22, %v2909_v23 }
  0xa2   :  { %v2084_v45 = vpack.c.bf16 %v268_v37, %v264_v35  ;;  %2143 = vmatpush1.bf16.msra.mxu1 %v2142_v36  ;;  %v241_v37 = vld [vmem:[#allocation5 + $0x4d0] sm:$0xff]  ;;  %v488_v22 = vld [vmem:[#allocation8 + $0x88] sm:$0xff] }
  0xa3   :  { %642 = vmatmul.mubr.f32.gmra.mrb[2].mxu0 %v2875_v51  ;;  %2145 = vmatprep.subr.bf16.mxu1 %v2144_v38  ;;  %v245_v38 = vld [vmem:[#allocation5 + $0x4f0] sm:$0xff] }
  0xa4   :  { %2067 = vmatpush1.bf16.msra.mxu0 %v2066_v49  ;;  %647 = vmatprep.mubr.f32.mxu0 %v2877_v52  ;;  %v2146_v49 = vpack.c.bf16 %v197_v40, %v193_v39  ;;  %v254_v39 = vld [vmem:[#allocation5 + $0x538] sm:$0xff] }
  0xa5   :  { %2069 = vmatprep.subr.bf16.mxu0 %v2068_v53  ;;  %v2148_v53 = vpack.c.bf16 %v206_v43, %v202_v42  ;;  %v249_v42 = vld [vmem:[#allocation5 + $0x510] sm:$0xff] }
  0xa6   :  { %2147 = vmatpush1.bf16.msra.mxu1 %v2146_v49  ;;  %v253_v43 = vld [vmem:[#allocation5 + $0x530] sm:$0xff]  ;;  %v270_v49 = vld [vmem:[#allocation5 + $0x5b8] sm:$0xff] }
  0xa7   :  { %1975 = vmatmul.mubr.msk.f32.gmra.mrb[4].mxu0 %vm2864_vm1, %v2883_v62  ;;  %2149 = vmatprep.subr.bf16.mxu1 %v2148_v53  ;;  %v2180_v50 = vpack.c.bf16 %v270_v49, %v266_v48  ;;  %v269_v53 = vld [vmem:[#allocation5 + $0x5b0] sm:$0xff]  ;;  %v503_v49 = vld [vmem:[#allocation8 + $0x100] sm:$0xff] }
  0xa8   :  { %2071 = vmatpush1.bf16.msra.mxu0 %v2070_v1  ;;  %653 = vmatprep.mubr.f32.mxu0 %v2879_v56  ;;  %v2150_v1 = vpack.c.bf16 %v205_v55, %v201_v54  ;;  %v274_v54 = vld [vmem:[#allocation5 + $0x5d8] sm:$0xff] }
  0xa9   :  { %2073 = vmatprep.subr.bf16.mxu0 %v2072_v3  ;;  %v2152_v3 = vpack.c.bf16 %v214_v58, %v210_v57  ;;  %v278_v55 = vld [vmem:[#allocation5 + $0x5f8] sm:$0xff] }
  0xaa   :  { %2151 = vmatpush1.bf16.msra.mxu1 %v2150_v1  ;;  %v2184_v58 = vpack.c.bf16 %v278_v55, %v274_v54  ;;  %v471_v1 = vld [vmem:[#allocation8] sm:$0xff] }
  0xab   :  { %654 = vmatmul.mubr.f32.gmra.mrb[6].mxu0 %v2893_v15  ;;  %2153 = vmatprep.subr.bf16.mxu1 %v2152_v3  ;;  %v476_v3 = vld [vmem:[#allocation8 + $0x28] sm:$0xff]  ;;  %v2936_v5 = vpack.c.bf16 %v473_v2, %v471_v1  ;;  %v507_v55 = vld [vmem:[#allocation8 + $0x120] sm:$0xff] }
  0xac   :  { %2075 = vmatpush1.bf16.msra.mxu0 %v2074_v14  ;;  %724 = vmatprep.mubr.f32.mxu0 %v2755_v29  ;;  %v230_v14 = vld [vmem:[#allocation5 + $0x478] sm:$0xff]  ;;  %v516_v2 = vld [vmem:[#allocation8 + $0x168] sm:$0xff] }
  0xad   :  { %2077 = vmatprep.subr.bf16.mxu0 %v2076_v16  ;;  %v2903_v16 = vsel %vm558_vm2, %v559_v6, %v2899_v7  ;;  %v2160_v17 = vpack.c.bf16 %v230_v14, %v226_v13  ;;  %v2939_v6 = vpack.c.bf16 %v478_v4, %v476_v3  ;;  %v2947_v13 = vpack.c.bf16 %v482_v11, %v480_v10  ;;  %v479_v14 = vld [vmem:[#allocation8 + $0x40] sm:$0xff]  ;;  %v518_v3 = vld [vmem:[#allocation8 + $0x178] sm:$0xff]  ;;  %v520_v11 = vld [vmem:[#allocation8 + $0x188] sm:$0xff] }
  0xae   :  { %2155 = vmatpush1.bf16.msra.mxu1 %v2154_v12  ;;  %v3009_v4 = vpack.c.bf16 %v518_v3, %v516_v2  ;;  %v288_v3 = vld [vmem:[#allocation7 + $0x48] sm:$0xff] }
  0xb0   :  { %2079 = vmatpush1.bf16.msra.mxu0 %v2078_v28  ;;  %v237_v28 = vld [vmem:[#allocation5 + $0x4b0] sm:$0xff] }
  0xb1   :  { %2081 = vmatprep.subr.bf16.mxu0 %v2080_v30  ;;  %1979 = vmatmul.mubr.msk.f32.vlgmr.msra.gmra.mrb[0].mxu1 %vm2864_vm1, %v2861_v31  ;;  %v242_v30 = vld [vmem:[#allocation5 + $0x4d8] sm:$0xff]  ;;  %v2166_v35 = vpack.c.bf16 %v237_v28, %v233_v27  ;;  %v487_v27 = vld [vmem:[#allocation8 + $0x80] sm:$0xff]  ;;  %v489_v28 = vld [vmem:[#allocation8 + $0x90] sm:$0xff] }
  0xb2   :  { %819 = vmatprep.mubr.f32.mxu1 %v2858_v25  ;;  %v2168_v36 = vpack.c.bf16 %v246_v32, %v242_v30  ;;  %v250_v31 = vld [vmem:[#allocation5 + $0x518] sm:$0xff]  ;;  %v2170_v25 = vpack.c.bf16 %v245_v38, %v241_v37  ;;  %v492_v30 = vld [vmem:[#allocation8 + $0xa8] sm:$0xff] }
  0xb3   :  { %v2172_v40 = vpack.c.bf16 %v254_v39, %v250_v31  ;;  %v494_v32 = vld [vmem:[#allocation8 + $0xb8] sm:$0xff]  ;;  %v496_v37 = vld [vmem:[#allocation8 + $0xc8] sm:$0xff] }
  0xb4   :  { %2083 = vmatpush1.bf16.msra.mxu0 %v2082_v44  ;;  %v258_v44 = vld [vmem:[#allocation5 + $0x558] sm:$0xff] }
  0xb5   :  { %2085 = vmatprep.subr.bf16.mxu0 %v2084_v45  ;;  %820 = vmatmul.mubr.f32.gmra.mrb[2].mxu1 %v2875_v51  ;;  %v262_v51 = vld [vmem:[#allocation5 + $0x578] sm:$0xff] }
  0xb6   :  { %825 = vmatprep.mubr.f32.mxu1 %v2877_v52  ;;  %v2174_v52 = vpack.c.bf16 %v253_v43, %v249_v42  ;;  %v2176_v45 = vpack.c.bf16 %v262_v51, %v258_v44  ;;  %v498_v38 = vld [vmem:[#allocation8 + $0xd8] sm:$0xff]  ;;  %v499_v51 = vld [vmem:[#allocation8 + $0xe0] sm:$0xff] }
  0xb7   :  { %v2978_v39 = vpack.c.bf16 %v498_v38, %v496_v37  ;;  %v502_v42 = vld [vmem:[#allocation8 + $0xf8] sm:$0xff]  ;;  %v527_v37 = vld [vmem:[#allocation8 + $0x1c0] sm:$0xff]  ;;  %v529_v38 = vld [vmem:[#allocation8 + $0x1d0] sm:$0xff] }
  0xb8   :  { %2087 = vmatpush1.bf16.msra.mxu0 %v2086_v59  ;;  %v273_v59 = vld [vmem:[#allocation5 + $0x5d0] sm:$0xff] }
  0xb9   :  { %2089 = vmatprep.subr.bf16.mxu0 %v2088_v60  ;;  %1981 = vmatmul.mubr.msk.f32.gmra.mrb[4].mxu1 %vm2864_vm1, %v2883_v62  ;;  %v2178_v62 = vpack.c.bf16 %v261_v47, %v257_v46  ;;  %v277_v60 = vld [vmem:[#allocation5 + $0x5f0] sm:$0xff]  ;;  %v504_v46 = vld [vmem:[#allocation8 + $0x108] sm:$0xff]  ;;  %v506_v47 = vld [vmem:[#allocation8 + $0x118] sm:$0xff] }
  0xba   :  { %831 = vmatprep.mubr.f32.mxu1 %v2879_v56  ;;  %v265_v56 = vld [vmem:[#allocation5 + $0x590] sm:$0xff]  ;;  %v2991_v48 = vpack.c.bf16 %v506_v47, %v504_v46  ;;  %v280_v47 = vld [vmem:[#allocation7 + $0x8] sm:$0xff] }
  0xbb   :  { %v2182_v57 = vpack.c.bf16 %v269_v53, %v265_v56  ;;  %v508_v56 = vld [vmem:[#allocation8 + $0x128] sm:$0xff]  ;;  %v510_v53 = vld [vmem:[#allocation8 + $0x138] sm:$0xff] }
  0xbc   :  { %2091 = vmatpush1.bf16.msra.mxu0 %v2090_v8  ;;  %v475_v8 = vld [vmem:[#allocation8 + $0x20] sm:$0xff]  ;;  %v2997_v54 = vpack.c.bf16 %v510_v53, %v508_v56  ;;  %v281_v53 = vld [vmem:[#allocation7 + $0x10] sm:$0xff] }
  0xbd   :  { %2157 = vmatprep.subr.bf16.mxu0 %v2156_v9  ;;  %832 = vmatmul.mubr.f32.gmra.mrb[6].mxu1 %v2893_v15  ;;  %v2186_v15 = vpack.c.bf16 %v277_v60, %v273_v59  ;;  %v477_v9 = vld [vmem:[#allocation8 + $0x30] sm:$0xff]  ;;  %v512_v59 = vld [vmem:[#allocation8 + $0x148] sm:$0xff]  ;;  %v514_v60 = vld [vmem:[#allocation8 + $0x158] sm:$0xff] }
  0xbe   :  { %v2943_v12 = vpack.c.bf16 %v477_v9, %v475_v8  ;;  %v3003_v61 = vpack.c.bf16 %v514_v60, %v512_v59  ;;  %v515_v8 = vld [vmem:[#allocation8 + $0x160] sm:$0xff]  ;;  %v517_v9 = vld [vmem:[#allocation8 + $0x170] sm:$0xff]  ;;  %v286_v59 = vld [vmem:[#allocation7 + $0x38] sm:$0xff] }
  0xbf   :  { %725 = vmatmul.mubr.f32.vlgmr.msra.gmra.mrb[0].mxu0 %v2903_v16  ;;  %v3011_v10 = vpack.c.bf16 %v517_v9, %v515_v8  ;;  %v279_v56 = vld [vmem:[#allocation7] sm:$0xff]  ;;  %v290_v8 = vld [vmem:[#allocation7 + $0x58] sm:$0xff] }
  0xc0   :  { %730 = vmatprep.mubr.f32.mxu0 %v2755_v29  ;;  %2159 = vmatpush1.bf16.msra.mxu0 %v2158_v41  ;;  %v481_v41 = vld [vmem:[#allocation8 + $0x50] sm:$0xff]  ;;  %v287_v9 = vld [vmem:[#allocation7 + $0x40] sm:$0xff] }
  0xc1   :  { %2161 = vmatprep.subr.bf16.mxu0 %v2160_v17  ;;  %v484_v17 = vld [vmem:[#allocation8 + $0x68] sm:$0xff]  ;;  %3422 = vst [vmem:[#allocation17_spill] sm:$0xff] %v3011_v10 }
  0xc2   :  { %v2956_v19 = vpack.c.bf16 %v486_v18, %v484_v17  ;;  %v519_v17 = vld [vmem:[#allocation8 + $0x180] sm:$0xff]  ;;  %v521_v18 = vld [vmem:[#allocation8 + $0x190] sm:$0xff] }
  0xc3   :  { %1976 = vmatmul.mubr.msk.f32.gmra.mrb[2].mxu0 %vm558_vm2, %v2899_v7 }
  0xc4   :  { %736 = vmatprep.mubr.f32.mxu0 %v2755_v29  ;;  %2163 = vmatpush1.bf16.msra.mxu0 %v2162_v24  ;;  %v490_v24 = vld [vmem:[#allocation8 + $0x98] sm:$0xff] }
  0xc5   :  { %2165 = vmatprep.subr.bf16.mxu0 %v2164_v26  ;;  %v2960_v26 = vpack.c.bf16 %v485_v21, %v483_v20  ;;  %v3017_v20 = vpack.c.bf16 %v521_v18, %v519_v17  ;;  %v524_v21 = vld [vmem:[#allocation8 + $0x1a8] sm:$0xff]  ;;  %v927_v17 = vlaneseq }
  0xc7   :  { %737 = vmatmul.mubr.f32.gmra.mrb[4].mxu0 %v2920_v33  ;;  %3424 = vst [vmem:[#allocation19_spill] sm:$0xff] %v3017_v20  ;;  %v3040_v18 = vshrl.u32 %v927_v17, 7 }
  0xc8   :  { %742 = vmatprep.mubr.f32.mxu0 %v2755_v29  ;;  %2167 = vmatpush1.bf16.msra.mxu0 %v2166_v35  ;;  %v2972_v35 = vpack.c.bf16 %v494_v32, %v492_v30  ;;  %v528_v32 = vld [vmem:[#allocation8 + $0x1c8] sm:$0xff] }
  0xc9   :  { %2169 = vmatprep.subr.bf16.mxu0 %v2168_v36  ;;  %v493_v36 = vld [vmem:[#allocation8 + $0xb0] sm:$0xff]  ;;  %3431 = vst [vmem:[#allocation26_spill] sm:$0xff] %v3040_v18 }
  0xcb   :  { %1977 = vmatmul.mubr.msk.f32.gmra.mrb[6].mxu0 %vm558_vm2, %v2909_v23 }
  0xcc   :  { %2171 = vmatpush1.bf16.msra.mxu0 %v2170_v25  ;;  %902 = vmatprep.mubr.f32.mxu0 %v2755_v29  ;;  %v497_v25 = vld [vmem:[#allocation8 + $0xd0] sm:$0xff] }
  0xcd   :  { %2173 = vmatprep.subr.bf16.mxu0 %v2172_v40  ;;  %v500_v40 = vld [vmem:[#allocation8 + $0xe8] sm:$0xff] }
  0xce   :  { %v2984_v44 = vpack.c.bf16 %v502_v42, %v500_v40  ;;  %v534_v40 = vld [vmem:[#allocation8 + $0x1f8] sm:$0xff]  ;;  %v531_v42 = vld [vmem:[#allocation8 + $0x1e0] sm:$0xff] }
  0xd0   :  { %2175 = vmatpush1.bf16.msra.mxu0 %v2174_v52  ;;  %v501_v52 = vld [vmem:[#allocation8 + $0xf0] sm:$0xff] }
  0xd1   :  { %2177 = vmatprep.subr.bf16.mxu0 %v2176_v45  ;;  %v2988_v45 = vpack.c.bf16 %v501_v52, %v499_v51  ;;  %v533_v52 = vld [vmem:[#allocation8 + $0x1f0] sm:$0xff] }
  0xd2   :  { %v3035_v46 = vpack.c.bf16 %v533_v52, %v531_v42 }
  0xd4   :  { %2179 = vmatpush1.bf16.msra.mxu0 %v2178_v62  ;;  %v505_v62 = vld [vmem:[#allocation8 + $0x110] sm:$0xff]  ;;  %3430 = vst [vmem:[#allocation25_spill] sm:$0xff] %v3035_v46 }
  0xd5   :  { %2181 = vmatprep.subr.bf16.mxu0 %v2180_v50  ;;  %v2993_v50 = vpack.c.bf16 %v505_v62, %v503_v49  ;;  %v282_v49 = vld [vmem:[#allocation7 + $0x18] sm:$0xff] }
  0xd6   :  { %v2252_v62 = vpack.c.bf16 %v282_v49, %v280_v47 }
  0xd8   :  { %2183 = vmatpush1.bf16.msra.mxu0 %v2182_v57  ;;  %v509_v57 = vld [vmem:[#allocation8 + $0x130] sm:$0xff]  ;;  %2253 = vmatprep.subr.bf16.mxu1 %v2252_v62 }
  0xd9   :  { %2185 = vmatprep.subr.bf16.mxu0 %v2184_v58  ;;  %v2999_v58 = vpack.c.bf16 %v509_v57, %v507_v55  ;;  %v2254_v55 = vpack.c.bf16 %v281_v53, %v279_v56  ;;  %v284_v57 = vld [vmem:[#allocation7 + $0x28] sm:$0xff] }
  0xda   :  { %v2256_v60 = vpack.c.bf16 %v286_v59, %v284_v57 }
  0xdb   :  { %2255 = vmatpush1.bf16.msra.mxu1 %v2254_v55 }
  0xdc   :  { %2187 = vmatpush1.bf16.msra.mxu0 %v2186_v15  ;;  %v513_v15 = vld [vmem:[#allocation8 + $0x150] sm:$0xff]  ;;  %2257 = vmatprep.subr.bf16.mxu1 %v2256_v60 }
  0xdd   :  { %2189 = vmatprep.subr.bf16.mxu0 %v2934_v0  ;;  %v3005_v1 = vpack.c.bf16 %v513_v15, %v511_v63  ;;  %v283_v63 = vld [vmem:[#allocation7 + $0x20] sm:$0xff]  ;;  %v285_v15 = vld [vmem:[#allocation7 + $0x30] sm:$0xff] }
  0xde   :  { %v2258_v2 = vpack.c.bf16 %v285_v15, %v283_v63 }
  0xdf   :  { %903 = vmatmul.mubr.f32.vlgmr.msra.gmra.mrb[8].mxu0 %v2903_v16  ;;  %v2952_v16 = vpack.c.bf16 %v481_v41, %v479_v14  ;;  %v522_v14 = vld [vmem:[#allocation8 + $0x198] sm:$0xff] }
  0xe0   :  { %2191 = vmatpush1.bf16.msra.mxu0 %v2936_v5  ;;  %908 = vmatprep.mubr.f32.mxu0 %v2755_v29  ;;  %v3015_v41 = vpack.c.bf16 %v522_v14, %v520_v11  ;;  %v2260_v11 = vpack.c.bf16 %v290_v8, %v288_v3 }
  0xe1   :  { %2193 = vmatprep.subr.bf16.mxu0 %v2939_v6  ;;  %2259 = vmatpush1.bf16.msra.mxu1 %v2258_v2 }
  0xe2   :  { %3423 = vst [vmem:[#allocation18_spill] sm:$0xff] %v3015_v41  ;;  %2261 = vmatprep.subr.bf16.mxu1 %v2260_v11 }
  0xe3   :  { %1982 = vmatmul.mubr.msk.f32.gmra.mrb[10].mxu0 %vm558_vm2, %v2899_v7  ;;  %v2964_v7 = vpack.c.bf16 %v490_v24, %v488_v22  ;;  %v526_v22 = vld [vmem:[#allocation8 + $0x1b8] sm:$0xff] }
  0xe4   :  { %2195 = vmatpush1.bf16.msra.mxu0 %v2943_v12  ;;  %914 = vmatprep.mubr.f32.mxu0 %v2755_v29  ;;  %v3021_v24 = vpack.c.bf16 %v526_v22, %v524_v21  ;;  %v3043_v21 = vsub.s32 0, %v3040_v18  ;;  %v3045_v22 = vld [vmem:[#allocation10] sm:$0xff] }
  0xe5   :  { %2197 = vmatprep.subr.bf16.mxu0 %v2947_v13  ;;  %3433 = vst [vmem:[#allocation28_spill] sm:$0xff] %v3045_v22 }
  0xe6   :  { %3425 = vst [vmem:[#allocation20_spill] sm:$0xff] %v3021_v24  ;;  %3432 = vst [vmem:[#allocation27_spill] sm:$0xff] %v3043_v21 }
  0xe7   :  { %915 = vmatmul.mubr.f32.gmra.mrb[12].mxu0 %v2920_v33  ;;  %v2969_v33 = vpack.c.bf16 %v489_v28, %v487_v27  ;;  %v523_v27 = vld [vmem:[#allocation8 + $0x1a0] sm:$0xff]  ;;  %v525_v28 = vld [vmem:[#allocation8 + $0x1b0] sm:$0xff] }
  0xe8   :  { %2199 = vmatpush1.bf16.msra.mxu0 %v2952_v16  ;;  %920 = vmatprep.mubr.f32.mxu0 %v2755_v29  ;;  %v491_v29 = vld [vmem:[#allocation8 + $0xa0] sm:$0xff]  ;;  %v3023_v30 = vpack.c.bf16 %v525_v28, %v523_v27  ;;  %v3047_v27 = vld [vmem:[#allocation10 + $0x8] sm:$0xff]  ;;  %v930_v28 = vrot.slane %v3045_v22, %v3043_v21 }
  0xe9   :  { %2201 = vmatprep.subr.bf16.mxu0 %v2956_v19  ;;  %v2975_v31 = vpack.c.bf16 %v493_v36, %v491_v29  ;;  %v530_v29 = vld [vmem:[#allocation8 + $0x1d8] sm:$0xff]  ;;  %3434 = vst [vmem:[#allocation29_spill] sm:$0xff] %v3047_v27 }
  0xea   :  { %3426 = vst [vmem:[#allocation21_spill] sm:$0xff] %v3023_v30  ;;  %v3027_v36 = vpack.c.bf16 %v530_v29, %v528_v32  ;;  %v934_v29 = vrot.slane %v3047_v27, %v3043_v21 }
  0xeb   :  { %1983 = vmatmul.mubr.msk.f32.gmra.mrb[14].mxu0 %vm558_vm2, %v2909_v23  ;;  %v495_v23 = vld [vmem:[#allocation8 + $0xc0] sm:$0xff] }
  0xec   :  { %2203 = vmatpush1.bf16.msra.mxu0 %v2960_v26  ;;  %v2981_v43 = vpack.c.bf16 %v497_v25, %v495_v23  ;;  %3427 = vst [vmem:[#allocation22_spill] sm:$0xff] %v3027_v36  ;;  %v3029_v23 = vpack.c.bf16 %v529_v38, %v527_v37  ;;  %v532_v25 = vld [vmem:[#allocation8 + $0x1e8] sm:$0xff] }
  0xed   :  { %2205 = vmatprep.subr.bf16.mxu0 %v2964_v7  ;;  %v3033_v51 = vpack.c.bf16 %v534_v40, %v532_v25 }
  0xee   :  { %3428 = vst [vmem:[#allocation23_spill] sm:$0xff] %v3029_v23 }
  0xef   :  { %3429 = vst [vmem:[#allocation24_spill] sm:$0xff] %v3033_v51 }
  0xf0   :  { %2207 = vmatpush1.bf16.msra.mxu0 %v2969_v33 }
  0xf1   :  { %2209 = vmatprep.subr.bf16.mxu0 %v2972_v35 }
  0xf4   :  { %2211 = vmatpush1.bf16.msra.mxu0 %v2975_v31 }
  0xf5   :  { %2213 = vmatprep.subr.bf16.mxu0 %v2978_v39 }
  0xf8   :  { %2215 = vmatpush1.bf16.msra.mxu0 %v2981_v43 }
  0xf9   :  { %2217 = vmatprep.subr.bf16.mxu0 %v2984_v44 }
  0xfc   :  { %2219 = vmatpush1.bf16.msra.mxu0 %v2988_v45 }
  0xfd   :  { %2221 = vmatprep.subr.bf16.mxu0 %v2991_v48 }
 0x100   :  { %2223 = vmatpush1.bf16.msra.mxu0 %v2993_v50 }
 0x101   :  { %2225 = vmatprep.subr.bf16.mxu0 %v2997_v54 }
 0x104   :  { %2227 = vmatpush1.bf16.msra.mxu0 %v2999_v58 }
 0x105   :  { %2229 = vmatprep.subr.bf16.mxu0 %v3003_v61 }
 0x108   :  { %2231 = vmatpush1.bf16.msra.mxu0 %v3005_v1 }
 0x109   :  { %2233 = vmatprep.subr.bf16.mxu0 %v3009_v4 }
 0x10c   :  { %2235 = vmatpush1.bf16.msra.mxu0 %v3011_v10 }
 0x10d   :  { %2237 = vmatprep.subr.bf16.mxu0 %v3015_v41 }
 0x110   :  { %2239 = vmatpush1.bf16.msra.mxu0 %v3017_v20 }
 0x111   :  { %2241 = vmatprep.subr.bf16.mxu0 %v3021_v24 }
 0x114   :  { %2243 = vmatpush1.bf16.msra.mxu0 %v3023_v30 }
 0x115   :  { %2245 = vmatprep.subr.bf16.mxu0 %v3027_v36 }
 0x118   :  { %2247 = vmatpush1.bf16.msra.mxu0 %v3029_v23 }
 0x119   :  { %2249 = vmatprep.subr.bf16.mxu0 %v3033_v51 }
 0x11c   :  { %2251 = vmatpush1.bf16.msra.mxu0 %v3035_v46 }
 0x11d   :  { %2445 = vmatprep.subr.bf16.mxu0 %v2934_v0  ;;  %v289_v0 = vld [vmem:[#allocation7 + $0x50] sm:$0xff] }
 0x11e   :  { %v2262_v14 = vpack.c.bf16 %v289_v0, %v287_v9 }
 0x120   :  { %2263 = vmatpush1.bf16.msra.mxu1 %v2262_v14 }
 0x184   :  { %v3053_v38 = vpop.f32.mrb[0].mxu1 }
 0x185   :  { %v3057_v40 = vpop.f32.mrb[1].mxu1 }
 0x188   :  { %v3065_v56 = vpop.f32.mrb[2].mxu1 }
 0x189   :  { %v3073_v59 = vpop.f32.mrb[3].mxu1 }
 0x18c   :  { %v3081_v0 = vpop.f32.mrb[4].mxu1 }
 0x192   :  { %v726_v32 = vpop.f32.mrb[0].mxu0 }
 0x193   :  { %v728_v37 = vpop.f32.mrb[1].mxu0  ;;  %v3055_v25 = vadd.f32 %v930_v28, %v726_v32 }
 0x194   :  { %v3059_v42 = vadd.f32 %v934_v29, %v728_v37  ;;  %v3085_v37 = vpop.f32.mrb[5].mxu1 }
 0x195   :  { %3435 = vst [vmem:[#allocation30_spill] sm:$0xff] %v3055_v25  ;;  %v987_v53 = vmul.f32 %v3055_v25, %v3055_v25 }
 0x196   :  { %3436 = vst [vmem:[#allocation31_spill] sm:$0xff] %v3059_v42  ;;  %v732_v52 = vpop.f32.mrb[2].mxu0  ;;  %v988_v60 = vmul.f32 %v3059_v42, %v3059_v42 }
 0x197   :  { %v3061_v47 = vadd.f32 %v930_v28, %v732_v52  ;;  %v734_v49 = vpop.f32.mrb[3].mxu0 }
 0x198   :  { %v3063_v62 = vadd.f32 %v934_v29, %v734_v49 }
 0x199   :  { %3437 = vst [vmem:[#allocation32_spill] sm:$0xff] %v3061_v47  ;;  %v959_v55 = vadd.f32 %v3061_v47, %v3055_v25  ;;  %v989_v57 = vmul.f32 %v3061_v47, %v3061_v47 }
 0x19a   :  { %3438 = vst [vmem:[#allocation33_spill] sm:$0xff] %v3063_v62  ;;  %v966_v63 = vadd.f32 %v3063_v62, %v3059_v42  ;;  %v990_v15 = vmul.f32 %v3063_v62, %v3063_v62  ;;  %v738_v2 = vpop.f32.mrb[4].mxu0 }
 0x19b   :  { %v995_v3 = vadd.f32 %v989_v57, %v987_v53  ;;  %v740_v8 = vpop.f32.mrb[5].mxu0  ;;  %v960_v14 = vrot.slane %v959_v55, 4  ;;  %v3083_v32 = vadd.f32 %v930_v28, %v738_v2 }
 0x19c   :  { %v967_v9 = vrot.slane %v966_v63, 4  ;;  %v1002_v11 = vadd.f32 %v990_v15, %v988_v60  ;;  %v3087_v49 = vadd.f32 %v934_v29, %v740_v8  ;;  %v3093_v60 = vpop.f32.mrb[6].mxu1 }
 0x19d   :  { %v996_v17 = vrot.slane %v995_v3, 4  ;;  %3439 = vst [vmem:[#allocation34_spill] sm:$0xff] %v3083_v32  ;;  %v961_v15 = vadd.f32 %v960_v14, %v959_v55  ;;  %v991_v2 = vmul.f32 %v3083_v32, %v3083_v32 }
 0x19e   :  { %v1003_v52 = vrot.slane %v1002_v11, 4  ;;  %3440 = vst [vmem:[#allocation35_spill] sm:$0xff] %v3087_v49  ;;  %v744_v34 = vpop.f32.mrb[6].mxu0  ;;  %v968_v53 = vadd.f32 %v967_v9, %v966_v63 }
 0x19f   :  { %v997_v47 = vadd.f32 %v996_v17, %v995_v3  ;;  %v3089_v27 = vadd.f32 %v930_v28, %v744_v34  ;;  %v746_v62 = vpop.f32.mrb[7].mxu0  ;;  %v3101_v3 = vpop.f32.mrb[7].mxu1  ;;  %v992_v34 = vmul.f32 %v3087_v49, %v3087_v49 }
 0x1a0   :  { %v1004_v57 = vadd.f32 %v1003_v52, %v1002_v11  ;;  %v3091_v22 = vadd.f32 %v934_v29, %v746_v62  ;;  %v969_v9 = vrot.slane %v968_v53, 2  ;;  %v962_v52 = vrot.slane %v961_v15, 2 }
 0x1a1   :  { %3441 = vst [vmem:[#allocation36_spill] sm:$0xff] %v3089_v27  ;;  %v973_v42 = vadd.f32 %v3089_v27, %v3083_v32  ;;  %v993_v8 = vmul.f32 %v3089_v27, %v3089_v27  ;;  %v998_v62 = vrot.slane %v997_v47, 2 }
 0x1a2   :  { %3442 = vst [vmem:[#allocation37_spill] sm:$0xff] %v3091_v22  ;;  %v980_v28 = vadd.f32 %v3091_v22, %v3087_v49  ;;  %v994_v29 = vmul.f32 %v3091_v22, %v3091_v22  ;;  %v1005_v11 = vrot.slane %v1004_v57, 2  ;;  %v970_v23 = vadd.f32 %v969_v9, %v968_v53 }
 0x1a3   :  { %v974_v55 = vrot.slane %v973_v42, 4  ;;  %v1009_v63 = vadd.f32 %v993_v8, %v991_v2  ;;  %v999_v18 = vadd.f32 %v998_v62, %v997_v47  ;;  %v963_v22 = vadd.f32 %v962_v52, %v961_v15 }
 0x1a4   :  { %v981_v14 = vrot.slane %v980_v28, 4  ;;  %v1016_v17 = vadd.f32 %v994_v29, %v992_v34  ;;  %v1006_v30 = vadd.f32 %v1005_v11, %v1004_v57  ;;  %v971_v29 = vrot.slane %v970_v23, 1 }
 0x1a5   :  { %v975_v27 = vadd.f32 %v974_v55, %v973_v42  ;;  %v1010_v32 = vrot.slane %v1009_v63, 4  ;;  %v1000_v41 = vrot.slane %v999_v18, 1 }
 0x1a6   :  { %v982_v25 = vadd.f32 %v981_v14, %v980_v28  ;;  %v1017_v21 = vrot.slane %v1016_v17, 4  ;;  %v1007_v55 = vrot.slane %v1006_v30, 1  ;;  %v964_v14 = vrot.slane %v963_v22, 1 }
 0x1a7   :  { %v976_v46 = vrot.slane %v975_v27, 2  ;;  %v1011_v51 = vadd.f32 %v1010_v32, %v1009_v63 }
 0x1a8   :  { %v983_v49 = vrot.slane %v982_v25, 2  ;;  %v1018_v36 = vadd.f32 %v1017_v21, %v1016_v17  ;;  %v1001_v21 = vadd.f32 %v1000_v41, %v999_v18 }
 0x1a9   :  { %v977_v24 = vadd.f32 %v976_v46, %v975_v27  ;;  %v1012_v20 = vrot.slane %v1011_v51, 2  ;;  %v972_v46 = vadd.f32 %v971_v29, %v970_v23  ;;  %v1008_v27 = vadd.f32 %v1007_v55, %v1006_v30  ;;  %v304_v29 = vld [vmem:[#allocation7 + $0xc8] sm:$0xff] }
 0x1aa   :  { %v984_v2 = vadd.f32 %v983_v49, %v982_v25  ;;  %v1019_v8 = vrot.slane %v1018_v36, 2  ;;  %v965_v49 = vadd.f32 %v964_v14, %v963_v22  ;;  %v305_v14 = vld [vmem:[#allocation7 + $0xd0] sm:$0xff] }
 0x1ab   :  { %v978_v10 = vrot.slane %v977_v24, 1  ;;  %v1013_v34 = vadd.f32 %v1012_v20, %v1011_v51 }
 0x1ac   :  { %v985_v42 = vrot.slane %v984_v2, 1  ;;  %v1020_v28 = vadd.f32 %v1019_v8, %v1018_v36  ;;  %v301_v8 = vld [vmem:[#allocation7 + $0xb0] sm:$0xff] }
 0x1ad   :  { %v1014_v47 = vrot.slane %v1013_v34, 1  ;;  %v979_v53 = vadd.f32 %v978_v10, %v977_v24 }
 0x1ae   :  { %v986_v62 = vadd.f32 %v985_v42, %v984_v2  ;;  %v1021_v32 = vrot.slane %v1020_v28, 1  ;;  %v299_v2 = vld [vmem:[#allocation7 + $0xa0] sm:$0xff]  ;;  %v306_v42 = vld [vmem:[#allocation7 + $0xd8] sm:$0xff] }
 0x1af   :  { %v1015_v57 = vadd.f32 %v1014_v47, %v1013_v34  ;;  %v1028_v9 = vsel %vm1027_vm4, %v979_v53, %v965_v49  ;;  %v2274_v34 = vpack.c.bf16 %v301_v8, %v299_v2  ;;  %v2276_v55 = vpack.c.bf16 %v306_v42, %v304_v29  ;;  %v340_v2 = vld [vmem:[#allocation7 + $0x1e8] sm:$0xff]  ;;  %v342_v8 = vld [vmem:[#allocation7 + $0x1f8] sm:$0xff]  ;;  %v339_v42 = vld [vmem:[#allocation7 + $0x1e0] sm:$0xff] }
 0x1b0   :  { %v1022_v25 = vadd.f32 %v1021_v32, %v1020_v28  ;;  %v1029_v51 = vsel %vm1027_vm4, %v986_v62, %v972_v46  ;;  %v303_v28 = vld [vmem:[#allocation7 + $0xc0] sm:$0xff]  ;;  %v308_v62 = vld [vmem:[#allocation7 + $0xe8] sm:$0xff]  ;;  %v310_v32 = vld [vmem:[#allocation7 + $0xf8] sm:$0xff]  ;;  %v2312_v29 = vpack.c.bf16 %v342_v8, %v340_v2 }
 0x1b1   :  { %v1037_v20 = vsel %vm1036_vm3, %v1015_v57, %v1001_v21  ;;  %v2278_v47 = vpack.c.bf16 %v305_v14, %v303_v28  ;;  %v2280_v53 = vpack.c.bf16 %v310_v32, %v308_v62  ;;  %v307_v21 = vld [vmem:[#allocation7 + $0xe0] sm:$0xff]  ;;  %v309_v57 = vld [vmem:[#allocation7 + $0xf0] sm:$0xff]  ;;  %v344_v14 = vld [vmem:[#allocation7 + $0x208] sm:$0xff]  ;;  %v2756_v32 = vmov 1966171168  }
 0x1b2   :  { %v1038_v36 = vsel %vm1036_vm3, %v1022_v25, %v1008_v27  ;;  %v904_v15 = vpop.f32.mrb[8].mxu0  ;;  %v1042_v24 = vsel %vm1041_vm5, %v1028_v9, %v1037_v20  ;;  %v2282_v46 = vpack.c.bf16 %v309_v57, %v307_v21  ;;  %v312_v27 = vld [vmem:[#allocation7 + $0x108] sm:$0xff]  ;;  %v314_v25 = vld [vmem:[#allocation7 + $0x118] sm:$0xff]  ;;  %v311_v20 = vld [vmem:[#allocation7 + $0x100] sm:$0xff] }
 0x1b3   :  { %v1043_v63 = vsel %vm1041_vm5, %v1029_v51, %v1038_v36  ;;  %v3115_v10 = vadd.f32 %v904_v15, %v3053_v38  ;;  %v906_v41 = vpop.f32.mrb[9].mxu0  ;;  %v2284_v49 = vpack.c.bf16 %v314_v25, %v312_v27  ;;  %v313_v51 = vld [vmem:[#allocation7 + $0x110] sm:$0xff]  ;;  %v316_v15 = vld [vmem:[#allocation7 + $0x128] sm:$0xff] }
 0x1b4   :  { %1108 = vmatprep.mubr.f32.mxu0 %v1043_v63  ;;  %v3119_v30 = vadd.f32 %v906_v41, %v3057_v40  ;;  %v2286_v36 = vpack.c.bf16 %v313_v51, %v311_v20  ;;  %v318_v63 = vld [vmem:[#allocation7 + $0x138] sm:$0xff]  ;;  %v315_v41 = vld [vmem:[#allocation7 + $0x120] sm:$0xff] }
 0x1b5   :  { %1109 = vmatmul.mubr.f32.vlgmr.msra.gmra.mrb[16].mxu0 %v1042_v24  ;;  %v2288_v9 = vpack.c.bf16 %v318_v63, %v316_v15  ;;  %v317_v24 = vld [vmem:[#allocation7 + $0x130] sm:$0xff] }
 0x1b6   :  { %v910_v23 = vpop.f32.mrb[10].mxu0  ;;  %2447 = vmatpush1.bf16.msra.mxu0 %v2936_v5 }
 0x1b7   :  { %v3123_v18 = vadd.f32 %v910_v23, %v3065_v56  ;;  %v912_v22 = vpop.f32.mrb[11].mxu0  ;;  %2449 = vmatprep.subr.bf16.mxu0 %v2939_v6  ;;  %v2290_v23 = vpack.c.bf16 %v317_v24, %v315_v41 }
 0x1b8   :  { %v3127_v38 = vadd.f32 %v912_v22, %v3073_v59  ;;  %v320_v22 = vld [vmem:[#allocation7 + $0x148] sm:$0xff] }
 0x1ba   :  { %v916_v11 = vpop.f32.mrb[12].mxu0  ;;  %2451 = vmatpush1.bf16.msra.mxu0 %v2943_v12 }
 0x1bb   :  { %v3131_v17 = vadd.f32 %v916_v11, %v3081_v0  ;;  %v918_v40 = vpop.f32.mrb[13].mxu0  ;;  %2453 = vmatprep.subr.bf16.mxu0 %v2947_v13  ;;  %v3443_v13 = vld [vmem:[#allocation17_spill] sm:$0xff]  ;;  %v297_v0 = vld [vmem:[#allocation7 + $0x90] sm:$0xff] }
 0x1bc   :  { %v3135_v5 = vadd.f32 %v918_v40, %v3085_v37  ;;  %v322_v11 = vld [vmem:[#allocation7 + $0x158] sm:$0xff] }
 0x1bd   :  { %v2292_v40 = vpack.c.bf16 %v322_v11, %v320_v22 }
 0x1be   :  { %v922_v56 = vpop.f32.mrb[14].mxu0  ;;  %2455 = vmatpush1.bf16.msra.mxu0 %v2952_v16  ;;  %v3444_v16 = vld [vmem:[#allocation18_spill] sm:$0xff] }
 0x1bf   :  { %v3139_v6 = vadd.f32 %v922_v56, %v3093_v60  ;;  %v924_v59 = vpop.f32.mrb[15].mxu0  ;;  %2457 = vmatprep.subr.bf16.mxu0 %v2956_v19  ;;  %v3445_v19 = vld [vmem:[#allocation19_spill] sm:$0xff]  ;;  %v319_v56 = vld [vmem:[#allocation7 + $0x140] sm:$0xff] }
 0x1c0   :  { %v3143_v12 = vadd.f32 %v924_v59, %v3101_v3  ;;  %v300_v60 = vld [vmem:[#allocation7 + $0xa8] sm:$0xff]  ;;  %v302_v3 = vld [vmem:[#allocation7 + $0xb8] sm:$0xff]  ;;  %v321_v59 = vld [vmem:[#allocation7 + $0x150] sm:$0xff] }
 0x1c1   :  { %v2272_v52 = vpack.c.bf16 %v302_v3, %v300_v60  ;;  %v335_v3 = vld [vmem:[#allocation7 + $0x1c0] sm:$0xff] }
 0x1c2   :  { %2459 = vmatpush1.bf16.msra.mxu0 %v2960_v26  ;;  %v3446_v26 = vld [vmem:[#allocation20_spill] sm:$0xff] }
 0x1c3   :  { %2461 = vmatprep.subr.bf16.mxu0 %v2964_v7  ;;  %v3447_v7 = vld [vmem:[#allocation21_spill] sm:$0xff] }
 0x1c6   :  { %2463 = vmatpush1.bf16.msra.mxu0 %v2969_v33  ;;  %v3448_v33 = vld [vmem:[#allocation22_spill] sm:$0xff] }
 0x1c7   :  { %2465 = vmatprep.subr.bf16.mxu0 %v2972_v35  ;;  %v3449_v35 = vld [vmem:[#allocation23_spill] sm:$0xff] }
 0x1ca   :  { %2467 = vmatpush1.bf16.msra.mxu0 %v2975_v31  ;;  %v3450_v31 = vld [vmem:[#allocation24_spill] sm:$0xff] }
 0x1cb   :  { %2469 = vmatprep.subr.bf16.mxu0 %v2978_v39  ;;  %v3451_v39 = vld [vmem:[#allocation25_spill] sm:$0xff] }
 0x1ce   :  { %2471 = vmatpush1.bf16.msra.mxu0 %v2981_v43  ;;  %v292_v43 = vld [vmem:[#allocation7 + $0x68] sm:$0xff] }
 0x1cf   :  { %2473 = vmatprep.subr.bf16.mxu0 %v2984_v44  ;;  %v294_v44 = vld [vmem:[#allocation7 + $0x78] sm:$0xff] }
 0x1d2   :  { %2475 = vmatpush1.bf16.msra.mxu0 %v2988_v45  ;;  %v2264_v45 = vpack.c.bf16 %v294_v44, %v292_v43  ;;  %v327_v43 = vld [vmem:[#allocation7 + $0x180] sm:$0xff] }
 0x1d3   :  { %2477 = vmatprep.subr.bf16.mxu0 %v2991_v48  ;;  %v291_v48 = vld [vmem:[#allocation7 + $0x60] sm:$0xff] }
 0x1d4   :  { %2265 = vmatprep.subr.bf16.mxu1 %v2264_v45  ;;  %v329_v45 = vld [vmem:[#allocation7 + $0x190] sm:$0xff] }
 0x1d6   :  { %2479 = vmatpush1.bf16.msra.mxu0 %v2993_v50  ;;  %v293_v50 = vld [vmem:[#allocation7 + $0x70] sm:$0xff] }
 0x1d7   :  { %2481 = vmatprep.subr.bf16.mxu0 %v2997_v54  ;;  %v2266_v54 = vpack.c.bf16 %v293_v50, %v291_v48  ;;  %v332_v48 = vld [vmem:[#allocation7 + $0x1a8] sm:$0xff]  ;;  %v334_v50 = vld [vmem:[#allocation7 + $0x1b8] sm:$0xff] }
 0x1d9   :  { %2267 = vmatpush1.bf16.msra.mxu1 %v2266_v54  ;;  %v2302_v54 = vpack.c.bf16 %v329_v45, %v327_v43 }
 0x1da   :  { %2483 = vmatpush1.bf16.msra.mxu0 %v2999_v58  ;;  %v296_v58 = vld [vmem:[#allocation7 + $0x88] sm:$0xff] }
 0x1db   :  { %2485 = vmatprep.subr.bf16.mxu0 %v3003_v61  ;;  %v298_v61 = vld [vmem:[#allocation7 + $0x98] sm:$0xff] }
 0x1de   :  { %2487 = vmatpush1.bf16.msra.mxu0 %v3005_v1  ;;  %v2268_v1 = vpack.c.bf16 %v298_v61, %v296_v58  ;;  %v2304_v58 = vpack.c.bf16 %v334_v50, %v332_v48  ;;  %v331_v61 = vld [vmem:[#allocation7 + $0x1a0] sm:$0xff]  ;;  %v3457_v48 = vld [vmem:[#allocation29_spill] sm:$0xff] }
 0x1df   :  { %2489 = vmatprep.subr.bf16.mxu0 %v3009_v4  ;;  %v295_v4 = vld [vmem:[#allocation7 + $0x80] sm:$0xff] }
 0x1e0   :  { %v2270_v37 = vpack.c.bf16 %v297_v0, %v295_v4  ;;  %2269 = vmatprep.subr.bf16.mxu1 %v2268_v1  ;;  %v333_v1 = vld [vmem:[#allocation7 + $0x1b0] sm:$0xff]  ;;  %v336_v4 = vld [vmem:[#allocation7 + $0x1c8] sm:$0xff]  ;;  %v338_v0 = vld [vmem:[#allocation7 + $0x1d8] sm:$0xff] }
 0x1e1   :  { %v2308_v60 = vpack.c.bf16 %v338_v0, %v336_v4 }
 0x1e2   :  { %2491 = vmatpush1.bf16.msra.mxu0 %v3443_v13  ;;  %2271 = vmatpush1.bf16.msra.mxu1 %v2270_v37  ;;  %v2294_v13 = vpack.c.bf16 %v321_v59, %v319_v56  ;;  %v2306_v37 = vpack.c.bf16 %v333_v1, %v331_v61  ;;  %v3453_v59 = vld [vmem:[#allocation27_spill] sm:$0xff]  ;;  %v3459_v61 = vld [vmem:[#allocation33_spill] sm:$0xff] }
 0x1e3   :  { %2493 = vmatprep.subr.bf16.mxu0 %v3444_v16  ;;  %2273 = vmatprep.subr.bf16.mxu1 %v2272_v52  ;;  %v324_v16 = vld [vmem:[#allocation7 + $0x168] sm:$0xff]  ;;  %v337_v52 = vld [vmem:[#allocation7 + $0x1d0] sm:$0xff] }
 0x1e6   :  { %2495 = vmatpush1.bf16.msra.mxu0 %v3445_v19  ;;  %2275 = vmatpush1.bf16.msra.mxu1 %v2274_v34  ;;  %v326_v19 = vld [vmem:[#allocation7 + $0x178] sm:$0xff]  ;;  %v2310_v34 = vpack.c.bf16 %v337_v52, %v335_v3  ;;  %v3461_v52 = vld [vmem:[#allocation35_spill] sm:$0xff] }
 0x1e7   :  { %2497 = vmatprep.subr.bf16.mxu0 %v3446_v26  ;;  %2277 = vmatprep.subr.bf16.mxu1 %v2276_v55  ;;  %v2296_v26 = vpack.c.bf16 %v326_v19, %v324_v16  ;;  %v341_v55 = vld [vmem:[#allocation7 + $0x1f0] sm:$0xff] }
 0x1e8   :  { %v2314_v28 = vpack.c.bf16 %v341_v55, %v339_v42 }
 0x1ea   :  { %2499 = vmatpush1.bf16.msra.mxu0 %v3447_v7  ;;  %2279 = vmatpush1.bf16.msra.mxu1 %v2278_v47  ;;  %v323_v7 = vld [vmem:[#allocation7 + $0x160] sm:$0xff]  ;;  %v346_v47 = vld [vmem:[#allocation7 + $0x218] sm:$0xff] }
 0x1eb   :  { %2501 = vmatprep.subr.bf16.mxu0 %v3448_v33  ;;  %2281 = vmatprep.subr.bf16.mxu1 %v2280_v53  ;;  %v325_v33 = vld [vmem:[#allocation7 + $0x170] sm:$0xff]  ;;  %v2316_v62 = vpack.c.bf16 %v346_v47, %v344_v14  ;;  %v1119_v53 = vunpack.c.l.s4 %v2756_v32 }
 0x1ec   :  { %v3462_v14 = vld [vmem:[#allocation36_spill] sm:$0xff] }
 0x1ed   :  { %v1120_v21 = vunpack.c.0.s8 %v1119_v53 }
 0x1ee   :  { %2503 = vmatpush1.bf16.msra.mxu0 %v3449_v35  ;;  %2283 = vmatpush1.bf16.msra.mxu1 %v2282_v46  ;;  %v2298_v35 = vpack.c.bf16 %v325_v33, %v323_v7  ;;  %v3452_v46 = vld [vmem:[#allocation26_spill] sm:$0xff] }
 0x1ef   :  { %2505 = vmatprep.subr.bf16.mxu0 %v3450_v31  ;;  %2285 = vmatprep.subr.bf16.mxu1 %v2284_v49  ;;  %v328_v31 = vld [vmem:[#allocation7 + $0x188] sm:$0xff]  ;;  %v3171_v27 = vsub.s32 %v1120_v21, %v3452_v46  ;;  %v3177_v56 = vsub.s32 1, %v3452_v46  ;;  %v1230_v7 = vsub.s32 2, %v3452_v46 }
 0x1f1   :  { %v1219_v50 = vrot.slane %v3457_v48, %v3177_v56 }
 0x1f2   :  { %2507 = vmatpush1.bf16.msra.mxu0 %v3451_v39  ;;  %2287 = vmatpush1.bf16.msra.mxu1 %v2286_v36  ;;  %v330_v39 = vld [vmem:[#allocation7 + $0x198] sm:$0xff] }
 0x1f3   :  { %2289 = vmatprep.subr.bf16.mxu1 %v2288_v9  ;;  %v2300_v44 = vpack.c.bf16 %v330_v39, %v328_v31  ;;  %v3455_v39 = vld [vmem:[#allocation31_spill] sm:$0xff] }
 0x1f6   :  { %2291 = vmatpush1.bf16.msra.mxu1 %v2290_v23 }
 0x1f7   :  { %2293 = vmatprep.subr.bf16.mxu1 %v2292_v40 }
 0x1fa   :  { %2295 = vmatpush1.bf16.msra.mxu1 %v2294_v13 }
 0x1fb   :  { %2297 = vmatprep.subr.bf16.mxu1 %v2296_v26 }
 0x1fe   :  { %2299 = vmatpush1.bf16.msra.mxu1 %v2298_v35  ;;  %v3454_v35 = vld [vmem:[#allocation30_spill] sm:$0xff] }
 0x1ff   :  { %2301 = vmatprep.subr.bf16.mxu1 %v2300_v44  ;;  %v3456_v44 = vld [vmem:[#allocation28_spill] sm:$0xff] }
 0x200   :  { %v1215_v45 = vrot.slane %v3456_v44, %v3177_v56  ;;  %v1231_v8 = vrot.slane %v3456_v44, %v1230_v7 }
 0x202   :  { %2303 = vmatpush1.bf16.msra.mxu1 %v2302_v54  ;;  %v3458_v54 = vld [vmem:[#allocation32_spill] sm:$0xff] }
 0x203   :  { %2305 = vmatprep.subr.bf16.mxu1 %v2304_v58 }
 0x206   :  { %2307 = vmatpush1.bf16.msra.mxu1 %v2306_v37 }
 0x207   :  { %2309 = vmatprep.subr.bf16.mxu1 %v2308_v60  ;;  %v3460_v60 = vld [vmem:[#allocation34_spill] sm:$0xff] }
 0x20a   :  { %2311 = vmatpush1.bf16.msra.mxu1 %v2310_v34  ;;  %v1235_v34 = vrot.slane %v3457_v48, %v1230_v7 }
 0x20b   :  { %2313 = vmatprep.subr.bf16.mxu1 %v2312_v29 }
 0x20e   :  { %2315 = vmatpush1.bf16.msra.mxu1 %v2314_v28 }
 0x20f   :  { %2317 = vmatprep.subr.bf16.mxu1 %v2316_v62  ;;  %v3463_v62 = vld [vmem:[#allocation37_spill] sm:$0xff] }
 0x288   :  { %v1110_v57 = vpop.f32.mrb[16].mxu0 }
 0x289   :  { %v1112_v25 = vpop.f32.mrb[17].mxu0 }
 0x28a   :  { %v1117_v49 = vcombine.low %v1110_v57, %v1112_v25 }
 0x28c   :  { %v1124_v20 = vrot.slane %v1117_v49, %v3171_v27 }
 0x28e   :  { %v1125_v51 = vcombine.high %v1124_v20, %v1124_v20  ;;  %v1132_v36 = vrot.slane %v1124_v20, %v3171_v27 }
 0x290   :  { %v1139_v15 = vrot.slane %v1125_v51, %v3171_v27  ;;  %v1142_v63 = vcombine.high %v1132_v36, %v1132_v36  ;;  %v1146_v9 = vmul.f32 %v1132_v36, %v1132_v36  ;;  %v1157_v13 = vrot.slane %v1132_v36, %v3453_v59 }
 0x291   :  { %v1161_v16 = vrot.slane %v1132_v36, %v3177_v56 }
 0x292   :  { %v1143_v41 = vcombine.high %v1139_v15, %v1139_v15  ;;  %v1147_v24 = vmul.f32 %v1139_v15, %v1139_v15  ;;  %v1148_v23 = vsub.f32 %v1142_v63, %v1146_v9  ;;  %v1165_v19 = vrot.slane %v1139_v15, %v3453_v59 }
 0x293   :  { %v1169_v26 = vrot.slane %v1139_v15, %v3177_v56  ;;  %v1174_v31 = vsub.f32 %v3454_v35, %v1157_v13  ;;  %v1175_v43 = vsub.f32 %v3455_v39, %v1161_v16  ;;  %v1176_v58 = vsub.f32 %v3458_v54, %v1157_v13 }
 0x294   :  { %v1149_v22 = vsub.f32 %v1143_v41, %v1147_v24  ;;  %v1150_v11 = vadd.f32 1e-05, %v1148_v23  ;;  %v1177_v1 = vsub.f32 %v3459_v61, %v1161_v16  ;;  %v1178_v3 = vsub.f32 %v3460_v60, %v1165_v19 }
 0x295   :  { %v1179_v2 = vsub.f32 %v3461_v52, %v1169_v26  ;;  %v1180_v47 = vsub.f32 %v3462_v14, %v1165_v19  ;;  %v1181_v32 = vsub.f32 %v3463_v62, %v1169_v26  ;;  %v350_v62 = vld [vmem:[#allocation7 + $0x238] sm:$0xff] }
 0x296   :  { %v1151_v40 = vadd.f32 1e-05, %v1149_v22  ;;  %2562 = vrsqrt.f32 %v1150_v11 }
 0x298   :  { %2564 = vrsqrt.f32 %v1151_v40 }
 0x2a0   :  { %v2563_v33 = vpop.eup %2562 }
 0x2a1   :  { %v1187_v4 = vrot.slane %v2563_v33, %v3453_v59  ;;  %v1191_v0 = vrot.slane %v2563_v33, %v3177_v56 }
 0x2a2   :  { %v2565_v37 = vpop.eup %2564 }
 0x2a3   :  { %v1204_v29 = vmul.f32 %v1187_v4, %v1174_v31  ;;  %v1205_v42 = vmul.f32 %v1191_v0, %v1175_v43  ;;  %v1206_v55 = vmul.f32 %v1187_v4, %v1176_v58  ;;  %v1207_v28 = vmul.f32 %v1191_v0, %v1177_v1 }
 0x2a4   :  { %v1199_v53 = vrot.slane %v2565_v37, %v3177_v56  ;;  %v1195_v21 = vrot.slane %v2565_v37, %v3453_v59 }
 0x2a5   :  { %v1220_v57 = vmul.f32 %v1215_v45, %v1204_v29  ;;  %v1221_v25 = vmul.f32 %v1219_v50, %v1205_v42  ;;  %v1223_v49 = vmul.f32 %v1219_v50, %v1207_v28  ;;  %v1222_v20 = vmul.f32 %v1215_v45, %v1206_v55  ;;  %v345_v29 = vld [vmem:[#allocation7 + $0x210] sm:$0xff] }
 0x2a6   :  { %v1209_v51 = vmul.f32 %v1199_v53, %v1179_v2  ;;  %v1208_v36 = vmul.f32 %v1195_v21, %v1178_v3  ;;  %v1211_v15 = vmul.f32 %v1199_v53, %v1181_v32  ;;  %v1210_v63 = vmul.f32 %v1195_v21, %v1180_v47  ;;  %v348_v47 = vld [vmem:[#allocation7 + $0x228] sm:$0xff] }
 0x2a7   :  { %v1236_v9 = vadd.f32 %v1231_v8, %v1220_v57  ;;  %v1237_v41 = vadd.f32 %v1235_v34, %v1221_v25  ;;  %v1239_v24 = vadd.f32 %v1235_v34, %v1223_v49  ;;  %v1238_v23 = vadd.f32 %v1231_v8, %v1222_v20 }
 0x2a8   :  { %v1225_v22 = vmul.f32 %v1219_v50, %v1209_v51  ;;  %v1224_v11 = vmul.f32 %v1215_v45, %v1208_v36  ;;  %v1227_v40 = vmul.f32 %v1219_v50, %v1211_v15  ;;  %v1226_v13 = vmul.f32 %v1215_v45, %v1210_v63 }
 0x2a9   :  { %v1244_v16 = vmul.f32 0.5, %v1236_v9  ;;  %v1245_v19 = vmul.f32 0.5, %v1237_v41  ;;  %v1247_v26 = vmul.f32 0.5, %v1239_v24  ;;  %v1246_v7 = vmul.f32 0.5, %v1238_v23 }
 0x2aa   :  { %v1241_v33 = vadd.f32 %v1235_v34, %v1225_v22  ;;  %v3202_v35 = vadd.f32 %v1231_v8, %v1224_v11  ;;  %v1243_v31 = vadd.f32 %v1235_v34, %v1227_v40  ;;  %v3204_v39 = vadd.f32 %v1231_v8, %v1226_v13  ;;  %v343_v34 = vld [vmem:[#allocation7 + $0x200] sm:$0xff]  ;;  %v349_v11 = vld [vmem:[#allocation7 + $0x230] sm:$0xff] }
 0x2ab   :  { %2566 = vtanh.f32 %v1244_v16  ;;  %v2318_v36 = vpack.c.bf16 %v345_v29, %v343_v34  ;;  %v347_v22 = vld [vmem:[#allocation7 + $0x220] sm:$0xff]  ;;  %v360_v34 = vld [vmem:[#allocation7 + $0x288] sm:$0xff]  ;;  %v362_v29 = vld [vmem:[#allocation7 + $0x298] sm:$0xff] }
 0x2ac   :  { %2568 = vtanh.f32 %v1245_v19  ;;  %v1249_v43 = vmul.f32 0.5, %v1241_v33  ;;  %v1248_v44 = vmul.f32 0.5, %v3202_v35  ;;  %v1251_v48 = vmul.f32 0.5, %v1243_v31 }
 0x2ad   :  { %2570 = vtanh.f32 %v1247_v26  ;;  %v1250_v45 = vmul.f32 0.5, %v3204_v39  ;;  %v352_v26 = vld [vmem:[#allocation7 + $0x248] sm:$0xff] }
 0x2ae   :  { %2572 = vtanh.f32 %v1246_v7  ;;  %v354_v7 = vld [vmem:[#allocation7 + $0x258] sm:$0xff] }
 0x2af   :  { %2574 = vtanh.f32 %v1249_v43 }
 0x2b0   :  { %2576 = vtanh.f32 %v1248_v44 }
 0x2b1   :  { %2578 = vtanh.f32 %v1251_v48  ;;  %v2322_v48 = vpack.c.bf16 %v349_v11, %v347_v22  ;;  %v369_v22 = vld [vmem:[#allocation7 + $0x2d0] sm:$0xff]  ;;  %v372_v11 = vld [vmem:[#allocation7 + $0x2e8] sm:$0xff] }
 0x2b2   :  { %2580 = vtanh.f32 %v1250_v45  ;;  %v2324_v45 = vpack.c.bf16 %v354_v7, %v352_v26  ;;  %v373_v26 = vld [vmem:[#allocation7 + $0x2f0] sm:$0xff]  ;;  %v376_v7 = vld [vmem:[#allocation7 + $0x308] sm:$0xff] }
 0x2b5   :  { %v2567_v50 = vpop.eup %2566 }
 0x2b6   :  { %v2569_v54 = vpop.eup %2568  ;;  %v1260_v58 = vadd.f32 1.0, %v2567_v50 }
 0x2b7   :  { %v2571_v61 = vpop.eup %2570  ;;  %v1261_v1 = vadd.f32 1.0, %v2569_v54  ;;  %v353_v54 = vld [vmem:[#allocation7 + $0x250] sm:$0xff] }
 0x2b8   :  { %v2573_v4 = vpop.eup %2572  ;;  %v1268_v0 = vmul.f32 0.5, %v1260_v58  ;;  %v1263_v37 = vadd.f32 1.0, %v2571_v61 }
 0x2b9   :  { %v2575_v60 = vpop.eup %2574  ;;  %v1269_v3 = vmul.f32 0.5, %v1261_v1  ;;  %v1262_v52 = vadd.f32 1.0, %v2573_v4  ;;  %v356_v1 = vld [vmem:[#allocation7 + $0x268] sm:$0xff]  ;;  %v358_v4 = vld [vmem:[#allocation7 + $0x278] sm:$0xff] }
 0x2ba   :  { %v2577_v2 = vpop.eup %2576  ;;  %v3208_v8 = vmul.f32 %v1268_v0, %v1236_v9  ;;  %v1271_v42 = vmul.f32 0.5, %v1263_v37  ;;  %v1265_v55 = vadd.f32 1.0, %v2575_v60  ;;  %v2328_v60 = vpack.c.bf16 %v358_v4, %v356_v1  ;;  %v379_v4 = vld [vmem:[#allocation7 + $0x320] sm:$0xff] }
 0x2bb   :  { %v2579_v28 = vpop.eup %2578  ;;  %v3210_v14 = vmul.f32 %v1269_v3, %v1237_v41  ;;  %v1270_v32 = vmul.f32 0.5, %v1262_v52  ;;  %v1264_v53 = vadd.f32 1.0, %v2577_v2  ;;  %v2320_v41 = vpack.c.bf16 %v350_v62, %v348_v47  ;;  %v355_v3 = vld [vmem:[#allocation7 + $0x260] sm:$0xff]  ;;  %v357_v52 = vld [vmem:[#allocation7 + $0x270] sm:$0xff] }
 0x2bc   :  { %v2581_v21 = vpop.eup %2580  ;;  %v1292_v57 = vrot.slane %v3208_v8, 7  ;;  %v3213_v25 = vmul.f32 %v1271_v42, %v1239_v24  ;;  %v1273_v49 = vmul.f32 0.5, %v1265_v55  ;;  %v1267_v20 = vadd.f32 1.0, %v2579_v28  ;;  %v359_v28 = vld [vmem:[#allocation7 + $0x280] sm:$0xff]  ;;  %v361_v47 = vld [vmem:[#allocation7 + $0x290] sm:$0xff] }
 0x2bd   :  { %v1293_v51 = vrot.slane %v3210_v14, 7  ;;  %v3216_v15 = vmul.f32 %v1270_v32, %v1238_v23  ;;  %v1266_v63 = vadd.f32 1.0, %v2581_v21  ;;  %v1272_v40 = vmul.f32 0.5, %v1264_v53  ;;  %v364_v32 = vld [vmem:[#allocation7 + $0x2a8] sm:$0xff]  ;;  %v366_v53 = vld [vmem:[#allocation7 + $0x2b8] sm:$0xff] }
 0x2be   :  { %v1296_v9 = vrot.slane %v3213_v25, 7  ;;  %v1275_v13 = vmul.f32 0.5, %v1267_v20  ;;  %v3222_v19 = vmul.f32 %v1273_v49, %v1241_v33  ;;  %v351_v33 = vld [vmem:[#allocation7 + $0x240] sm:$0xff]  ;;  %v2330_v42 = vpack.c.bf16 %v357_v52, %v355_v3  ;;  %v365_v20 = vld [vmem:[#allocation7 + $0x2b0] sm:$0xff] }
 0x2bf   :  { %1985 = vmatprep.mubr.msk.f32.mxu1 %vm2864_vm1, %v1293_v51  ;;  %v1294_v24 = vrot.slane %v3216_v15, 7  ;;  %v1274_v43 = vmul.f32 0.5, %v1266_v63  ;;  %v3230_v50 = vmul.f32 %v1272_v40, %v3202_v35  ;;  %v2326_v35 = vpack.c.bf16 %v353_v54, %v351_v33  ;;  %v363_v49 = vld [vmem:[#allocation7 + $0x2a0] sm:$0xff]  ;;  %v374_v40 = vld [vmem:[#allocation7 + $0x2f8] sm:$0xff]  ;;  %v377_v33 = vld [vmem:[#allocation7 + $0x310] sm:$0xff] }
 0x2c0   :  { %1987 = vmatmul.mubr.msk.f32.vlgmr.msra.gmra.mrb[8].mxu1 %vm2864_vm1, %v1292_v57  ;;  %v1297_v23 = vsel %vm545_vm0, %v1293_v51, %v1296_v9  ;;  %v3227_v44 = vmul.f32 %v1275_v13, %v1243_v31  ;;  %v1299_v61 = vrot.slane %v3222_v19, 7  ;;  %v2332_v55 = vpack.c.bf16 %v362_v29, %v360_v34  ;;  %v368_v51 = vld [vmem:[#allocation7 + $0x2c8] sm:$0xff]  ;;  %v383_v52 = vld [vmem:[#allocation7 + $0x340] sm:$0xff]  ;;  %v390_v29 = vld [vmem:[#allocation7 + $0x378] sm:$0xff] }
 0x2c1   :  { %2319 = vmatpush1.bf16.msra.mxu1 %v2318_v36  ;;  %1418 = vmatprep.mubr.f32.mxu1 %v1297_v23  ;;  %v1295_v58 = vsel %vm545_vm0, %v1292_v57, %v1294_v24  ;;  %v3235_v0 = vmul.f32 %v1274_v43, %v3204_v39  ;;  %v1298_v37 = vrot.slane %v3230_v50, 7  ;;  %v2334_v21 = vpack.c.bf16 %v361_v47, %v359_v28  ;;  %v370_v36 = vld [vmem:[#allocation7 + $0x2d8] sm:$0xff]  ;;  %v371_v24 = vld [vmem:[#allocation7 + $0x2e0] sm:$0xff]  ;;  %v380_v54 = vld [vmem:[#allocation7 + $0x328] sm:$0xff] }
 0x2c2   :  { %2321 = vmatprep.subr.bf16.mxu1 %v2320_v41  ;;  %v1302_v31 = vrot.slane %v3227_v44, 7  ;;  %v2336_v57 = vpack.c.bf16 %v366_v53, %v364_v32  ;;  %v2338_v63 = vpack.c.bf16 %v365_v20, %v363_v49  ;;  %v2340_v9 = vpack.c.bf16 %v370_v36, %v368_v51  ;;  %v367_v41 = vld [vmem:[#allocation7 + $0x2c0] sm:$0xff]  ;;  %v378_v43 = vld [vmem:[#allocation7 + $0x318] sm:$0xff]  ;;  %v388_v34 = vld [vmem:[#allocation7 + $0x368] sm:$0xff] }
 0x2c3   :  { %v1300_v2 = vrot.slane %v3235_v0, 7  ;;  %v2342_v13 = vpack.c.bf16 %v369_v22, %v367_v41  ;;  %v2344_v16 = vpack.c.bf16 %v374_v40, %v372_v11  ;;  %v2346_v23 = vpack.c.bf16 %v373_v26, %v371_v24  ;;  %v389_v28 = vld [vmem:[#allocation7 + $0x370] sm:$0xff]  ;;  %v392_v47 = vld [vmem:[#allocation7 + $0x388] sm:$0xff]  ;;  %v398_v20 = vld [vmem:[#allocation7 + $0x3b8] sm:$0xff] }
 0x2c4   :  { %1419 = vmatmul.mubr.f32.gmra.mrb[10].mxu1 %v1295_v58  ;;  %v1303_v39 = vsel %vm545_vm0, %v1299_v61, %v1302_v31  ;;  %v382_v58 = vld [vmem:[#allocation7 + $0x338] sm:$0xff]  ;;  %v381_v31 = vld [vmem:[#allocation7 + $0x330] sm:$0xff]  ;;  %v396_v49 = vld [vmem:[#allocation7 + $0x3a8] sm:$0xff] }
 0x2c5   :  { %2323 = vmatpush1.bf16.msra.mxu1 %v2322_v48  ;;  %1989 = vmatprep.mubr.msk.f32.mxu1 %vm2864_vm1, %v1299_v61  ;;  %v1301_v62 = vsel %vm545_vm0, %v1298_v37, %v1300_v2  ;;  %v2348_v48 = vpack.c.bf16 %v378_v43, %v376_v7  ;;  %v2352_v1 = vpack.c.bf16 %v382_v58, %v380_v54  ;;  %v385_v2 = vld [vmem:[#allocation7 + $0x350] sm:$0xff]  ;;  %v400_v41 = vld [vmem:[#allocation7 + $0x3c8] sm:$0xff]  ;;  %v402_v22 = vld [vmem:[#allocation7 + $0x3d8] sm:$0xff] }
 0x2c6   :  { %2325 = vmatprep.subr.bf16.mxu1 %v2324_v45  ;;  %v375_v45 = vld [vmem:[#allocation7 + $0x300] sm:$0xff]  ;;  %v2368_v36 = vpack.c.bf16 %v398_v20, %v396_v49  ;;  %v2372_v40 = vpack.c.bf16 %v402_v22, %v400_v41  ;;  %v404_v24 = vld [vmem:[#allocation7 + $0x3e8] sm:$0xff]  ;;  %v406_v26 = vld [vmem:[#allocation7 + $0x3f8] sm:$0xff]  ;;  %v1319_v49 = vrot.slane %v3210_v14, 1  ;;  %v1320_v20 = vrot.slane %v3213_v25, 1 }
 0x2c7   :  { %v2350_v61 = vpack.c.bf16 %v377_v33, %v375_v45  ;;  %v2376_v43 = vpack.c.bf16 %v406_v26, %v404_v24  ;;  %v408_v45 = vld [vmem:[#allocation7 + $0x408] sm:$0xff]  ;;  %v410_v33 = vld [vmem:[#allocation7 + $0x418] sm:$0xff] }
 0x2c8   :  { %1991 = vmatmul.mubr.msk.f32.gmra.mrb[12].mxu1 %vm2864_vm1, %v1298_v37  ;;  %v386_v37 = vld [vmem:[#allocation7 + $0x358] sm:$0xff]  ;;  %v2380_v58 = vpack.c.bf16 %v410_v33, %v408_v45  ;;  %v428_v41 = vld [vmem:[#allocation7 + $0x4a8] sm:$0xff] }
 0x2c9   :  { %2327 = vmatpush1.bf16.msra.mxu1 %v2326_v35  ;;  %1430 = vmatprep.mubr.f32.mxu1 %v1303_v39  ;;  %v384_v35 = vld [vmem:[#allocation7 + $0x348] sm:$0xff]  ;;  %v2358_v39 = vpack.c.bf16 %v385_v2, %v383_v52  ;;  %v418_v2 = vld [vmem:[#allocation7 + $0x458] sm:$0xff] }
 0x2ca   :  { %2329 = vmatprep.subr.bf16.mxu1 %v2328_v60  ;;  %v2354_v60 = vpack.c.bf16 %v381_v31, %v379_v4  ;;  %v2356_v3 = vpack.c.bf16 %v386_v37, %v384_v35  ;;  %v412_v4 = vld [vmem:[#allocation7 + $0x428] sm:$0xff]  ;;  %v414_v31 = vld [vmem:[#allocation7 + $0x438] sm:$0xff] }
 0x2cb   :  { %v2384_v37 = vpack.c.bf16 %v414_v31, %v412_v4  ;;  %v416_v52 = vld [vmem:[#allocation7 + $0x448] sm:$0xff]  ;;  %v430_v22 = vld [vmem:[#allocation7 + $0x4b8] sm:$0xff] }
 0x2cc   :  { %1431 = vmatmul.mubr.f32.gmra.mrb[14].mxu1 %v1301_v62  ;;  %v394_v62 = vld [vmem:[#allocation7 + $0x398] sm:$0xff]  ;;  %v432_v24 = vld [vmem:[#allocation7 + $0x4c8] sm:$0xff] }
 0x2cd   :  { %2331 = vmatpush1.bf16.msra.mxu1 %v2330_v42  ;;  %1501 = vmatprep.mubr.f32.mxu1 %v3210_v14  ;;  %v2360_v42 = vpack.c.bf16 %v390_v29, %v388_v34  ;;  %v2364_v53 = vpack.c.bf16 %v394_v62, %v392_v47  ;;  %v2388_v29 = vpack.c.bf16 %v418_v2, %v416_v52  ;;  %v434_v26 = vld [vmem:[#allocation7 + $0x4d8] sm:$0xff]  ;;  %v436_v45 = vld [vmem:[#allocation7 + $0x4e8] sm:$0xff] }
 0x2ce   :  { %2333 = vmatprep.subr.bf16.mxu1 %v2332_v55  ;;  %v387_v55 = vld [vmem:[#allocation7 + $0x360] sm:$0xff]  ;;  %v438_v33 = vld [vmem:[#allocation7 + $0x4f8] sm:$0xff]  ;;  %v440_v4 = vld [vmem:[#allocation7 + $0x508] sm:$0xff] }
 0x2cf   :  { %v2362_v32 = vpack.c.bf16 %v389_v28, %v387_v55  ;;  %v420_v55 = vld [vmem:[#allocation7 + $0x468] sm:$0xff]  ;;  %v422_v28 = vld [vmem:[#allocation7 + $0x478] sm:$0xff] }
 0x2d0   :  { %v2392_v62 = vpack.c.bf16 %v422_v28, %v420_v55  ;;  %v442_v31 = vld [vmem:[#allocation7 + $0x518] sm:$0xff]  ;;  %v444_v52 = vld [vmem:[#allocation7 + $0x528] sm:$0xff] }
 0x2d1   :  { %2335 = vmatpush1.bf16.msra.mxu1 %v2334_v21  ;;  %v391_v21 = vld [vmem:[#allocation7 + $0x380] sm:$0xff]  ;;  %v446_v2 = vld [vmem:[#allocation7 + $0x538] sm:$0xff]  ;;  %v448_v55 = vld [vmem:[#allocation7 + $0x548] sm:$0xff] }
 0x2d2   :  { %2337 = vmatprep.subr.bf16.mxu1 %v2336_v57  ;;  %v393_v57 = vld [vmem:[#allocation7 + $0x390] sm:$0xff]  ;;  %v450_v28 = vld [vmem:[#allocation7 + $0x558] sm:$0xff] }
 0x2d3   :  { %v2366_v51 = vpack.c.bf16 %v393_v57, %v391_v21  ;;  %v424_v21 = vld [vmem:[#allocation7 + $0x488] sm:$0xff]  ;;  %v426_v57 = vld [vmem:[#allocation7 + $0x498] sm:$0xff] }
 0x2d5   :  { %2339 = vmatpush1.bf16.msra.mxu1 %v2338_v63  ;;  %v395_v63 = vld [vmem:[#allocation7 + $0x3a0] sm:$0xff] }
 0x2d6   :  { %2341 = vmatprep.subr.bf16.mxu1 %v2340_v9  ;;  %v397_v9 = vld [vmem:[#allocation7 + $0x3b0] sm:$0xff] }
 0x2d7   :  { %v2370_v11 = vpack.c.bf16 %v397_v9, %v395_v63  ;;  %v423_v63 = vld [vmem:[#allocation7 + $0x480] sm:$0xff]  ;;  %v425_v9 = vld [vmem:[#allocation7 + $0x490] sm:$0xff] }
 0x2d8   :  { %v2398_v14 = vpack.c.bf16 %v425_v9, %v423_v63  ;;  %v453_v63 = vld [vmem:[#allocation7 + $0x570] sm:$0xff]  ;;  %v456_v9 = vld [vmem:[#allocation7 + $0x588] sm:$0xff] }
 0x2d9   :  { %2343 = vmatpush1.bf16.msra.mxu1 %v2342_v13  ;;  %v399_v13 = vld [vmem:[#allocation7 + $0x3c0] sm:$0xff] }
 0x2da   :  { %2345 = vmatprep.subr.bf16.mxu1 %v2344_v16  ;;  %v401_v16 = vld [vmem:[#allocation7 + $0x3d0] sm:$0xff] }
 0x2db   :  { %v2374_v7 = vpack.c.bf16 %v401_v16, %v399_v13  ;;  %v427_v13 = vld [vmem:[#allocation7 + $0x4a0] sm:$0xff]  ;;  %v429_v16 = vld [vmem:[#allocation7 + $0x4b0] sm:$0xff] }
 0x2dd   :  { %2347 = vmatpush1.bf16.msra.mxu1 %v2346_v23  ;;  %v403_v23 = vld [vmem:[#allocation7 + $0x3e0] sm:$0xff] }
 0x2de   :  { %2349 = vmatprep.subr.bf16.mxu1 %v2348_v48  ;;  %v405_v48 = vld [vmem:[#allocation7 + $0x3f0] sm:$0xff] }
 0x2df   :  { %v2378_v54 = vpack.c.bf16 %v405_v48, %v403_v23  ;;  %v431_v23 = vld [vmem:[#allocation7 + $0x4c0] sm:$0xff]  ;;  %v433_v48 = vld [vmem:[#allocation7 + $0x4d0] sm:$0xff] }
 0x2e1   :  { %2351 = vmatpush1.bf16.msra.mxu1 %v2350_v61  ;;  %v407_v61 = vld [vmem:[#allocation7 + $0x400] sm:$0xff] }
 0x2e2   :  { %2353 = vmatprep.subr.bf16.mxu1 %v2352_v1  ;;  %v409_v1 = vld [vmem:[#allocation7 + $0x410] sm:$0xff] }
 0x2e3   :  { %v2382_v35 = vpack.c.bf16 %v409_v1, %v407_v61  ;;  %v435_v61 = vld [vmem:[#allocation7 + $0x4e0] sm:$0xff]  ;;  %v437_v1 = vld [vmem:[#allocation7 + $0x4f0] sm:$0xff] }
 0x2e5   :  { %2355 = vmatpush1.bf16.msra.mxu1 %v2354_v60  ;;  %v411_v60 = vld [vmem:[#allocation7 + $0x420] sm:$0xff] }
 0x2e6   :  { %2357 = vmatprep.subr.bf16.mxu1 %v2356_v3  ;;  %v413_v3 = vld [vmem:[#allocation7 + $0x430] sm:$0xff] }
 0x2e7   :  { %v2386_v34 = vpack.c.bf16 %v413_v3, %v411_v60  ;;  %v439_v60 = vld [vmem:[#allocation7 + $0x500] sm:$0xff]  ;;  %v441_v3 = vld [vmem:[#allocation7 + $0x510] sm:$0xff] }
 0x2e9   :  { %2359 = vmatpush1.bf16.msra.mxu1 %v2358_v39  ;;  %v415_v39 = vld [vmem:[#allocation7 + $0x440] sm:$0xff] }
 0x2ea   :  { %2361 = vmatprep.subr.bf16.mxu1 %v2360_v42  ;;  %v417_v42 = vld [vmem:[#allocation7 + $0x450] sm:$0xff] }
 0x2eb   :  { %v2390_v47 = vpack.c.bf16 %v417_v42, %v415_v39  ;;  %v443_v39 = vld [vmem:[#allocation7 + $0x520] sm:$0xff]  ;;  %v445_v42 = vld [vmem:[#allocation7 + $0x530] sm:$0xff] }
 0x2ed   :  { %2363 = vmatpush1.bf16.msra.mxu1 %v2362_v32  ;;  %v419_v32 = vld [vmem:[#allocation7 + $0x460] sm:$0xff] }
 0x2ee   :  { %2365 = vmatprep.subr.bf16.mxu1 %v2364_v53  ;;  %v421_v53 = vld [vmem:[#allocation7 + $0x470] sm:$0xff] }
 0x2f1   :  { %2367 = vmatpush1.bf16.msra.mxu1 %v2366_v51  ;;  %v2394_v51 = vpack.c.bf16 %v421_v53, %v419_v32  ;;  %v447_v32 = vld [vmem:[#allocation7 + $0x540] sm:$0xff]  ;;  %v449_v53 = vld [vmem:[#allocation7 + $0x550] sm:$0xff] }
 0x2f2   :  { %2369 = vmatprep.subr.bf16.mxu1 %v2368_v36  ;;  %v2396_v36 = vpack.c.bf16 %v426_v57, %v424_v21  ;;  %v452_v21 = vld [vmem:[#allocation7 + $0x568] sm:$0xff]  ;;  %v454_v57 = vld [vmem:[#allocation7 + $0x578] sm:$0xff] }
 0x2f5   :  { %2371 = vmatpush1.bf16.msra.mxu1 %v2370_v11  ;;  %v1321_v11 = vsel %vm558_vm2, %v1319_v49, %v1320_v20  ;;  %v2422_v49 = vpack.c.bf16 %v449_v53, %v447_v32 }
 0x2f6   :  { %2373 = vmatprep.subr.bf16.mxu1 %v2372_v40  ;;  %v2400_v40 = vpack.c.bf16 %v430_v22, %v428_v41  ;;  %v458_v41 = vld [vmem:[#allocation7 + $0x598] sm:$0xff] }
 0x2f9   :  { %2375 = vmatpush1.bf16.msra.mxu1 %v2374_v7  ;;  %v2402_v7 = vpack.c.bf16 %v429_v16, %v427_v13  ;;  %v460_v13 = vld [vmem:[#allocation7 + $0x5a8] sm:$0xff]  ;;  %v462_v16 = vld [vmem:[#allocation7 + $0x5b8] sm:$0xff] }
 0x2fa   :  { %2377 = vmatprep.subr.bf16.mxu1 %v2376_v43  ;;  %v2404_v43 = vpack.c.bf16 %v434_v26, %v432_v24  ;;  %v2432_v26 = vpack.c.bf16 %v462_v16, %v460_v13 }
 0x2fd   :  { %2379 = vmatpush1.bf16.msra.mxu1 %v2378_v54  ;;  %v2406_v54 = vpack.c.bf16 %v433_v48, %v431_v23  ;;  %v464_v23 = vld [vmem:[#allocation7 + $0x5c8] sm:$0xff]  ;;  %v466_v48 = vld [vmem:[#allocation7 + $0x5d8] sm:$0xff] }
 0x2fe   :  { %2381 = vmatprep.subr.bf16.mxu1 %v2380_v58  ;;  %v2408_v58 = vpack.c.bf16 %v438_v33, %v436_v45  ;;  %v2436_v33 = vpack.c.bf16 %v466_v48, %v464_v23 }
 0x300   :  { %1502 = vmatmul.mubr.f32.vlgmr.msra.gmra.mrb[8].mxu1 %v3208_v8 }
 0x301   :  { %1507 = vmatprep.mubr.f32.mxu1 %v3213_v25  ;;  %2383 = vmatpush1.bf16.msra.mxu1 %v2382_v35  ;;  %v2410_v35 = vpack.c.bf16 %v437_v1, %v435_v61  ;;  %v468_v61 = vld [vmem:[#allocation7 + $0x5e8] sm:$0xff]  ;;  %v470_v1 = vld [vmem:[#allocation7 + $0x5f8] sm:$0xff]  ;;  %v1342_v25 = vsub.s32 3, %v3452_v46 }
 0x302   :  { %2385 = vmatprep.subr.bf16.mxu1 %v2384_v37  ;;  %v2412_v37 = vpack.c.bf16 %v442_v31, %v440_v4  ;;  %v2440_v31 = vpack.c.bf16 %v470_v1, %v468_v61 }
 0x304   :  { %1508 = vmatmul.mubr.f32.gmra.mrb[10].mxu1 %v3216_v15 }
 0x305   :  { %1513 = vmatprep.mubr.f32.mxu1 %v3222_v19  ;;  %2387 = vmatpush1.bf16.msra.mxu1 %v2386_v34  ;;  %v2414_v34 = vpack.c.bf16 %v441_v3, %v439_v60  ;;  %v1316_v3 = vrot.slane %v3208_v8, 1 }
 0x306   :  { %2389 = vmatprep.subr.bf16.mxu1 %v2388_v29  ;;  %v2416_v29 = vpack.c.bf16 %v446_v2, %v444_v52  ;;  %v1317_v52 = vrot.slane %v3216_v15, 1 }
 0x308   :  { %1514 = vmatmul.mubr.f32.gmra.mrb[12].mxu1 %v3230_v50  ;;  %v1318_v2 = vsel %vm558_vm2, %v1316_v3, %v1317_v52 }
 0x309   :  { %1519 = vmatprep.mubr.f32.mxu1 %v3227_v44  ;;  %2391 = vmatpush1.bf16.msra.mxu1 %v2390_v47  ;;  %v2418_v47 = vpack.c.bf16 %v445_v42, %v443_v39  ;;  %v1322_v39 = vrot.slane %v3230_v50, 1  ;;  %v1323_v42 = vrot.slane %v3235_v0, 1 }
 0x30a   :  { %2393 = vmatprep.subr.bf16.mxu1 %v2392_v62  ;;  %v2420_v62 = vpack.c.bf16 %v450_v28, %v448_v55 }
 0x30b   :  { %v1324_v15 = vsel %vm558_vm2, %v1322_v39, %v1323_v42 }
 0x30c   :  { %1520 = vmatmul.mubr.f32.gmra.mrb[14].mxu1 %v3235_v0  ;;  %v3278_v0 = vld [vmem:[#allocation10 + $0x8] sm:$0xff] }
 0x30d   :  { %2395 = vmatpush1.bf16.msra.mxu1 %v2394_v51  ;;  %1590 = vmatprep.mubr.f32.mxu1 %v1321_v11  ;;  %v2424_v51 = vpack.c.bf16 %v454_v57, %v452_v21  ;;  %v2428_v11 = vpack.c.bf16 %v458_v41, %v456_v9 }
 0x30e   :  { %2397 = vmatprep.subr.bf16.mxu1 %v2396_v36  ;;  %v451_v36 = vld [vmem:[#allocation7 + $0x560] sm:$0xff] }
 0x30f   :  { %v2426_v22 = vpack.c.bf16 %v453_v63, %v451_v36 }
 0x311   :  { %2399 = vmatpush1.bf16.msra.mxu1 %v2398_v14  ;;  %v455_v14 = vld [vmem:[#allocation7 + $0x580] sm:$0xff] }
 0x312   :  { %2401 = vmatprep.subr.bf16.mxu1 %v2400_v40  ;;  %v457_v40 = vld [vmem:[#allocation7 + $0x590] sm:$0xff] }
 0x313   :  { %v2430_v24 = vpack.c.bf16 %v457_v40, %v455_v14 }
 0x315   :  { %2403 = vmatpush1.bf16.msra.mxu1 %v2402_v7  ;;  %v459_v7 = vld [vmem:[#allocation7 + $0x5a0] sm:$0xff] }
 0x316   :  { %2405 = vmatprep.subr.bf16.mxu1 %v2404_v43  ;;  %v461_v43 = vld [vmem:[#allocation7 + $0x5b0] sm:$0xff] }
 0x317   :  { %v2434_v45 = vpack.c.bf16 %v461_v43, %v459_v7 }
 0x319   :  { %2407 = vmatpush1.bf16.msra.mxu1 %v2406_v54  ;;  %v463_v54 = vld [vmem:[#allocation7 + $0x5c0] sm:$0xff] }
 0x31a   :  { %2409 = vmatprep.subr.bf16.mxu1 %v2408_v58  ;;  %v465_v58 = vld [vmem:[#allocation7 + $0x5d0] sm:$0xff] }
 0x31b   :  { %v2438_v4 = vpack.c.bf16 %v465_v58, %v463_v54 }
 0x31d   :  { %2411 = vmatpush1.bf16.msra.mxu1 %v2410_v35  ;;  %v467_v35 = vld [vmem:[#allocation7 + $0x5e0] sm:$0xff] }
 0x31e   :  { %2413 = vmatprep.subr.bf16.mxu1 %v2412_v37  ;;  %v469_v37 = vld [vmem:[#allocation7 + $0x5f0] sm:$0xff] }
 0x31f   :  { %v2442_v60 = vpack.c.bf16 %v469_v37, %v467_v35 }
 0x321   :  { %2415 = vmatpush1.bf16.msra.mxu1 %v2414_v34  ;;  %v1325_v34 = vrot.slane %v3222_v19, 1  ;;  %v3275_v19 = vld [vmem:[#allocation10] sm:$0xff] }
 0x322   :  { %2417 = vmatprep.subr.bf16.mxu1 %v2416_v29  ;;  %v1326_v29 = vrot.slane %v3227_v44, 1  ;;  %v1343_v44 = vrot.slane %v3275_v19, %v1342_v25 }
 0x324   :  { %v1327_v8 = vsel %vm558_vm2, %v1325_v34, %v1326_v29 }
 0x325   :  { %2419 = vmatpush1.bf16.msra.mxu1 %v2418_v47 }
 0x326   :  { %2421 = vmatprep.subr.bf16.mxu1 %v2420_v62 }
 0x329   :  { %2423 = vmatpush1.bf16.msra.mxu1 %v2422_v49 }
 0x32a   :  { %2425 = vmatprep.subr.bf16.mxu1 %v2424_v51 }
 0x32d   :  { %2427 = vmatpush1.bf16.msra.mxu1 %v2426_v22 }
 0x32e   :  { %2429 = vmatprep.subr.bf16.mxu1 %v2428_v11 }
 0x331   :  { %2431 = vmatpush1.bf16.msra.mxu1 %v2430_v24 }
 0x332   :  { %2433 = vmatprep.subr.bf16.mxu1 %v2432_v26 }
 0x335   :  { %2435 = vmatpush1.bf16.msra.mxu1 %v2434_v45 }
 0x336   :  { %2437 = vmatprep.subr.bf16.mxu1 %v2436_v33 }
 0x339   :  { %2439 = vmatpush1.bf16.msra.mxu1 %v2438_v4 }
 0x33a   :  { %2441 = vmatprep.subr.bf16.mxu1 %v2440_v31 }
 0x33d   :  { %2443 = vmatpush1.bf16.msra.mxu1 %v2442_v60 }
 0x340   :  { %1591 = vmatmul.mubr.f32.vlgmr.msra.gmra.mrb[8].mxu1 %v1318_v2 }
 0x341   :  { %1992 = vmatprep.mubr.msk.f32.mxu1 %vm558_vm2, %v1320_v20  ;;  %v1347_v20 = vrot.slane %v3278_v0, %v1342_v25 }
 0x344   :  { %1993 = vmatmul.mubr.msk.f32.gmra.mrb[10].mxu1 %vm558_vm2, %v1317_v52 }
 0x345   :  { %1602 = vmatprep.mubr.f32.mxu1 %v1327_v8 }
 0x348   :  { %1603 = vmatmul.mubr.f32.gmra.mrb[12].mxu1 %v1324_v15 }
 0x349   :  { %1994 = vmatprep.mubr.msk.f32.mxu1 %vm558_vm2, %v1326_v29 }
 0x34c   :  { %1995 = vmatmul.mubr.msk.f32.gmra.mrb[14].mxu1 %vm558_vm2, %v1323_v42 }
 0x413   :  { %v1592_v50 = vpop.f32.mrb[8].mxu1 }
 0x414   :  { %v1594_v55 = vpop.f32.mrb[9].mxu1  ;;  %v3281_v28 = vadd.f32 %v1592_v50, %v1343_v44 }
 0x415   :  { %v3283_v47 = vadd.f32 %v1594_v55, %v1347_v20 }
 0x416   :  { %v1643_v57 = vmul.f32 %v3281_v28, %v3281_v28 }
 0x417   :  { %v1598_v62 = vpop.f32.mrb[10].mxu1  ;;  %v1644_v36 = vmul.f32 %v3283_v47, %v3283_v47 }
 0x418   :  { %v3285_v32 = vadd.f32 %v1598_v62, %v1343_v44  ;;  %v1600_v53 = vpop.f32.mrb[11].mxu1 }
 0x419   :  { %v3287_v21 = vadd.f32 %v1600_v53, %v1347_v20 }
 0x41a   :  { %v1615_v49 = vadd.f32 %v3285_v32, %v3281_v28  ;;  %v1645_v51 = vmul.f32 %v3285_v32, %v3285_v32 }
 0x41b   :  { %v1622_v63 = vadd.f32 %v3287_v21, %v3283_v47  ;;  %v1646_v9 = vmul.f32 %v3287_v21, %v3287_v21  ;;  %v1604_v41 = vpop.f32.mrb[12].mxu1 }
 0x41c   :  { %v1651_v22 = vadd.f32 %v1645_v51, %v1643_v57  ;;  %v1606_v11 = vpop.f32.mrb[13].mxu1  ;;  %v1616_v13 = vrot.slane %v1615_v49, 4  ;;  %v3301_v24 = vadd.f32 %v1604_v41, %v1343_v44 }
 0x41d   :  { %v1623_v14 = vrot.slane %v1622_v63, 4  ;;  %v1658_v40 = vadd.f32 %v1646_v9, %v1644_v36  ;;  %v3303_v7 = vadd.f32 %v1606_v11, %v1347_v20 }
 0x41e   :  { %v1652_v16 = vrot.slane %v1651_v22, 4  ;;  %v1617_v61 = vadd.f32 %v1616_v13, %v1615_v49  ;;  %v1647_v1 = vmul.f32 %v3301_v24, %v3301_v24 }
 0x41f   :  { %v1659_v26 = vrot.slane %v1658_v40, 4  ;;  %v1610_v43 = vpop.f32.mrb[14].mxu1  ;;  %v1624_v33 = vadd.f32 %v1623_v14, %v1622_v63  ;;  %v1648_v35 = vmul.f32 %v3303_v7, %v3303_v7 }
 0x420   :  { %v1653_v23 = vadd.f32 %v1652_v16, %v1651_v22  ;;  %v3305_v48 = vadd.f32 %v1610_v43, %v1343_v44  ;;  %v1612_v45 = vpop.f32.mrb[15].mxu1  ;;  %v1618_v8 = vrot.slane %v1617_v61, 2 }
 0x421   :  { %v1660_v54 = vadd.f32 %v1659_v26, %v1658_v40  ;;  %v3307_v58 = vadd.f32 %v1612_v45, %v1347_v20  ;;  %v1625_v34 = vrot.slane %v1624_v33, 2 }
 0x422   :  { %v1629_v4 = vadd.f32 %v3305_v48, %v3301_v24  ;;  %v1649_v31 = vmul.f32 %v3305_v48, %v3305_v48  ;;  %v1654_v3 = vrot.slane %v1653_v23, 2  ;;  %v1619_v36 = vadd.f32 %v1618_v8, %v1617_v61 }
 0x423   :  { %v1636_v37 = vadd.f32 %v3307_v58, %v3303_v7  ;;  %v1650_v60 = vmul.f32 %v3307_v58, %v3307_v58  ;;  %v1661_v29 = vrot.slane %v1660_v54, 2  ;;  %v1626_v53 = vadd.f32 %v1625_v34, %v1624_v33 }
 0x424   :  { %v1630_v52 = vrot.slane %v1629_v4, 4  ;;  %v1665_v2 = vadd.f32 %v1649_v31, %v1647_v1  ;;  %v1655_v20 = vadd.f32 %v1654_v3, %v1653_v23  ;;  %v1620_v45 = vrot.slane %v1619_v36, 1 }
 0x425   :  { %v1637_v39 = vrot.slane %v1636_v37, 4  ;;  %v1672_v42 = vadd.f32 %v1650_v60, %v1648_v35  ;;  %v1662_v51 = vadd.f32 %v1661_v29, %v1660_v54  ;;  %v1627_v13 = vrot.slane %v1626_v53, 1 }
 0x426   :  { %v1631_v15 = vadd.f32 %v1630_v52, %v1629_v4  ;;  %v1666_v25 = vrot.slane %v1665_v2, 4  ;;  %v1656_v40 = vrot.slane %v1655_v20, 1  ;;  %v1621_v60 = vadd.f32 %v1620_v45, %v1619_v36 }
 0x427   :  { %v1638_v44 = vadd.f32 %v1637_v39, %v1636_v37  ;;  %v1673_v50 = vrot.slane %v1672_v42, 4  ;;  %v1663_v26 = vrot.slane %v1662_v51, 1  ;;  %v1628_v54 = vadd.f32 %v1627_v13, %v1626_v53 }
 0x428   :  { %v1632_v55 = vrot.slane %v1631_v15, 2  ;;  %v1667_v62 = vadd.f32 %v1666_v25, %v1665_v2  ;;  %v1657_v31 = vadd.f32 %v1656_v40, %v1655_v20 }
 0x429   :  { %v1639_v57 = vrot.slane %v1638_v44, 2  ;;  %v1674_v49 = vadd.f32 %v1673_v50, %v1672_v42  ;;  %v1664_v61 = vadd.f32 %v1663_v26, %v1662_v51 }
 0x42a   :  { %v1633_v63 = vadd.f32 %v1632_v55, %v1631_v15  ;;  %v1668_v9 = vrot.slane %v1667_v62, 2 }
 0x42b   :  { %v1640_v41 = vadd.f32 %v1639_v57, %v1638_v44  ;;  %v1675_v22 = vrot.slane %v1674_v49, 2 }
 0x42c   :  { %v1634_v11 = vrot.slane %v1633_v63, 1  ;;  %v1669_v14 = vadd.f32 %v1668_v9, %v1667_v62  ;;  %v1867_v9 = vsub.s32 4, %v3452_v46 }
 0x42d   :  { %v1641_v16 = vrot.slane %v1640_v41, 1  ;;  %v1676_v43 = vadd.f32 %v1675_v22, %v1674_v49 }
 0x42e   :  { %v1670_v23 = vrot.slane %v1669_v14, 1  ;;  %v1635_v33 = vadd.f32 %v1634_v11, %v1633_v63  ;;  %v1872_v26 = vrot.slane %v3278_v0, %v1867_v9 }
 0x42f   :  { %v1642_v1 = vadd.f32 %v1641_v16, %v1640_v41  ;;  %v1677_v4 = vrot.slane %v1676_v43, 1 }
 0x430   :  { %v1671_v35 = vadd.f32 %v1670_v23, %v1669_v14  ;;  %v1683_v29 = vsel %vm1027_vm4, %v1635_v33, %v1621_v60  ;;  %v1868_v14 = vrot.slane %v3275_v19, %v1867_v9 }
 0x431   :  { %v1678_v37 = vadd.f32 %v1677_v4, %v1676_v43  ;;  %v1684_v52 = vsel %vm1027_vm4, %v1642_v1, %v1628_v54  ;;  %v1883_v43 = vsub.s32 5, %v3452_v46 }
 0x432   :  { %v1691_v3 = vsel %vm1036_vm3, %v1671_v35, %v1657_v31 }
 0x433   :  { %v1692_v2 = vsel %vm1036_vm3, %v1678_v37, %v1664_v61  ;;  %v1695_v39 = vsel %vm1041_vm5, %v1683_v29, %v1691_v3  ;;  %v1884_v3 = vrot.slane %v3275_v19, %v1883_v43 }
 0x434   :  { %v1696_v34 = vsel %vm1041_vm5, %v1684_v52, %v1692_v2  ;;  %v1888_v52 = vrot.slane %v3278_v0, %v1883_v43 }
 0x435   :  { %1761 = vmatprep.mubr.f32.mxu0 %v1696_v34 }
 0x436   :  { %1762 = vmatmul.mubr.f32.vlgmr.msra.gmra.mrb[18].mxu0 %v1695_v39 }
 0x509   :  { %v1763_v42 = vpop.f32.mrb[18].mxu0 }
 0x50a   :  { %v1765_v8 = vpop.f32.mrb[19].mxu0 }
 0x50b   :  { %v1770_v15 = vcombine.low %v1763_v42, %v1765_v8 }
 0x50d   :  { %v1777_v25 = vrot.slane %v1770_v15, %v3171_v27 }
 0x50f   :  { %v1778_v44 = vcombine.high %v1777_v25, %v1777_v25  ;;  %v1785_v50 = vrot.slane %v1777_v25, %v3171_v27 }
 0x511   :  { %v1792_v20 = vrot.slane %v1778_v44, %v3171_v27  ;;  %v1795_v55 = vcombine.high %v1785_v50, %v1785_v50  ;;  %v1799_v62 = vmul.f32 %v1785_v50, %v1785_v50  ;;  %v1810_v41 = vrot.slane %v1785_v50, %v3453_v59 }
 0x512   :  { %v1814_v22 = vrot.slane %v1785_v50, %v3177_v56 }
 0x513   :  { %v1796_v53 = vcombine.high %v1792_v20, %v1792_v20  ;;  %v1800_v57 = vmul.f32 %v1792_v20, %v1792_v20  ;;  %v1801_v49 = vsub.f32 %v1795_v55, %v1799_v62  ;;  %v1818_v11 = vrot.slane %v1792_v20, %v3453_v59 }
 0x514   :  { %v1822_v27 = vrot.slane %v1792_v20, %v3177_v56  ;;  %v1827_v13 = vsub.f32 %v3281_v28, %v1810_v41  ;;  %v1828_v16 = vsub.f32 %v3283_v47, %v1814_v22  ;;  %v1829_v45 = vsub.f32 %v3285_v32, %v1810_v41 }
 0x515   :  { %v1802_v51 = vsub.f32 %v1796_v53, %v1800_v57  ;;  %v1803_v36 = vadd.f32 1e-05, %v1801_v49  ;;  %v1830_v23 = vsub.f32 %v3287_v21, %v1814_v22  ;;  %v1831_v31 = vsub.f32 %v3301_v24, %v1818_v11 }
 0x516   :  { %v1832_v35 = vsub.f32 %v3303_v7, %v1822_v27  ;;  %v1833_v28 = vsub.f32 %v3305_v48, %v1818_v11  ;;  %v1834_v47 = vsub.f32 %v3307_v58, %v1822_v27  ;;  %v945_v11 = vsub.s32 6, %v3452_v46 }
 0x517   :  { %v1804_v63 = vadd.f32 1e-05, %v1802_v51  ;;  %2582 = vrsqrt.f32 %v1803_v36 }
 0x519   :  { %2584 = vrsqrt.f32 %v1804_v63 }
 0x521   :  { %v2583_v40 = vpop.eup %2582 }
 0x522   :  { %v1840_v1 = vrot.slane %v2583_v40, %v3453_v59  ;;  %v1844_v4 = vrot.slane %v2583_v40, %v3177_v56  ;;  %v950_v40 = vrot.slane %v3278_v0, %v945_v11 }
 0x523   :  { %v2585_v33 = vpop.eup %2584 }
 0x524   :  { %v1848_v54 = vrot.slane %v2585_v33, %v3453_v59  ;;  %v1852_v61 = vrot.slane %v2585_v33, %v3177_v56  ;;  %v1857_v32 = vmul.f32 %v1840_v1, %v1827_v13  ;;  %v1858_v37 = vmul.f32 %v1844_v4, %v1828_v16 }
 0x525   :  { %v1859_v21 = vmul.f32 %v1840_v1, %v1829_v45  ;;  %v1860_v60 = vmul.f32 %v1844_v4, %v1830_v23 }
 0x526   :  { %v1861_v2 = vmul.f32 %v1848_v54, %v1831_v31  ;;  %v1862_v24 = vmul.f32 %v1852_v61, %v1832_v35  ;;  %v1863_v34 = vmul.f32 %v1848_v54, %v1833_v28  ;;  %v1864_v7 = vmul.f32 %v1852_v61, %v1834_v47 }
 0x527   :  { %v1873_v29 = vmul.f32 %v1868_v14, %v1857_v32  ;;  %v1874_v48 = vmul.f32 %v1872_v26, %v1858_v37  ;;  %v1875_v39 = vmul.f32 %v1868_v14, %v1859_v21  ;;  %v1876_v58 = vmul.f32 %v1872_v26, %v1860_v60 }
 0x528   :  { %v1877_v42 = vmul.f32 %v1868_v14, %v1861_v2  ;;  %v1878_v59 = vmul.f32 %v1872_v26, %v1862_v24  ;;  %v1879_v8 = vmul.f32 %v1868_v14, %v1863_v34  ;;  %v1880_v56 = vmul.f32 %v1872_v26, %v1864_v7 }
 0x529   :  { %v1889_v15 = vadd.f32 %v1884_v3, %v1873_v29  ;;  %v1890_v25 = vadd.f32 %v1888_v52, %v1874_v48  ;;  %v1891_v44 = vadd.f32 %v1884_v3, %v1875_v39  ;;  %v1892_v50 = vadd.f32 %v1888_v52, %v1876_v58 }
 0x52a   :  { %v1893_v20 = vadd.f32 %v1884_v3, %v1877_v42  ;;  %v1894_v55 = vadd.f32 %v1888_v52, %v1878_v59  ;;  %v3352_v62 = vadd.f32 %v1884_v3, %v1879_v8  ;;  %v3354_v51 = vadd.f32 %v1888_v52, %v1880_v56 }
 0x52b   :  { %v1897_v53 = vmul.f32 0.5, %v1889_v15  ;;  %v1898_v57 = vmul.f32 0.5, %v1890_v25  ;;  %v1899_v49 = vmul.f32 0.5, %v1891_v44  ;;  %v1900_v36 = vmul.f32 0.5, %v1892_v50 }
 0x52c   :  { %v1901_v63 = vmul.f32 0.5, %v1893_v20  ;;  %v1902_v9 = vmul.f32 0.5, %v1894_v55  ;;  %v1903_v41 = vmul.f32 0.5, %v3352_v62  ;;  %v1904_v22 = vmul.f32 0.5, %v3354_v51 }
 0x52d   :  { %2586 = vtanh.f32 %v1897_v53  ;;  %v946_v14 = vrot.slane %v3275_v19, %v945_v11  ;;  %v952_v31 = vadd.f32 %v950_v40, %v3119_v30  ;;  %v954_v32 = vadd.f32 %v950_v40, %v3127_v38 }
 0x52e   :  { %2588 = vtanh.f32 %v1898_v57  ;;  %v956_v38 = vadd.f32 %v950_v40, %v3135_v5 }
 0x52f   :  { %2590 = vtanh.f32 %v1899_v49  ;;  %v951_v33 = vadd.f32 %v946_v14, %v3115_v10  ;;  %v953_v47 = vadd.f32 %v946_v14, %v3123_v18  ;;  %v955_v18 = vadd.f32 %v946_v14, %v3131_v17 }
 0x530   :  { %2592 = vtanh.f32 %v1900_v36  ;;  %v957_v56 = vadd.f32 %v946_v14, %v3139_v6  ;;  %v958_v17 = vadd.f32 %v950_v40, %v3143_v12 }
 0x531   :  { %2594 = vtanh.f32 %v1901_v63 }
 0x532   :  { %2596 = vtanh.f32 %v1902_v9 }
 0x533   :  { %2598 = vtanh.f32 %v1903_v41 }
 0x534   :  { %2600 = vtanh.f32 %v1904_v22 }
 0x537   :  { %v2587_v27 = vpop.eup %2586 }
 0x538   :  { %v2589_v13 = vpop.eup %2588  ;;  %v1913_v16 = vadd.f32 1.0, %v2587_v27 }
 0x539   :  { %v2591_v26 = vpop.eup %2590  ;;  %v1914_v43 = vadd.f32 1.0, %v2589_v13 }
 0x53a   :  { %v2593_v45 = vpop.eup %2592  ;;  %v1915_v23 = vadd.f32 1.0, %v2591_v26  ;;  %v1921_v1 = vmul.f32 0.5, %v1913_v16 }
 0x53b   :  { %v2595_v4 = vpop.eup %2594  ;;  %v1916_v46 = vadd.f32 1.0, %v2593_v45  ;;  %v1922_v35 = vmul.f32 0.5, %v1914_v43 }
 0x53c   :  { %v2597_v28 = vpop.eup %2596  ;;  %v1917_v19 = vadd.f32 1.0, %v2595_v4  ;;  %v1923_v54 = vmul.f32 0.5, %v1915_v23  ;;  %v1929_v0 = vmul.f32 %v1921_v1, %v1889_v15 }
 0x53d   :  { %v2599_v61 = vpop.eup %2598  ;;  %v1918_v37 = vadd.f32 1.0, %v2597_v28  ;;  %v1924_v21 = vmul.f32 0.5, %v1916_v46  ;;  %v1930_v60 = vmul.f32 %v1922_v35, %v1890_v25 }
 0x53e   :  { %v2601_v3 = vpop.eup %2600  ;;  %v1919_v52 = vadd.f32 1.0, %v2599_v61  ;;  %v1925_v2 = vmul.f32 0.5, %v1917_v19  ;;  %v1931_v10 = vmul.f32 %v1923_v54, %v1891_v44  ;;  %v1937_v24 = vadd.f32 %v1929_v0, %v951_v33 }
 0x53f   :  { %v1920_v30 = vadd.f32 1.0, %v2601_v3  ;;  %v1926_v34 = vmul.f32 0.5, %v1918_v37  ;;  %v1932_v7 = vmul.f32 %v1924_v21, %v1892_v50  ;;  %v1938_v29 = vadd.f32 %v1930_v60, %v952_v31 }
 0x540   :  { %v1927_v48 = vmul.f32 0.5, %v1919_v52  ;;  %v1933_v39 = vmul.f32 %v1925_v2, %v1893_v20  ;;  %v1939_v58 = vadd.f32 %v1931_v10, %v953_v47  ;;  %1945 = vst [vmem:[#allocation11] sm:$0xff] %v1937_v24 }
 0x541   :  { %v1928_v42 = vmul.f32 0.5, %v1920_v30  ;;  %v1934_v59 = vmul.f32 %v1926_v34, %v1894_v55  ;;  %v1940_v8 = vadd.f32 %v1932_v7, %v954_v32  ;;  %1946 = vst [vmem:[#allocation11 + $0x8] sm:$0xff] %v1938_v29 }
 0x542   :  { %v1935_v15 = vmul.f32 %v1927_v48, %v3352_v62  ;;  %1947 = vst [vmem:[#allocation11 + $0x10] sm:$0xff] %v1939_v58  ;;  %v1941_v25 = vadd.f32 %v1933_v39, %v955_v18 }
 0x543   :  { %v1936_v44 = vmul.f32 %v1928_v42, %v3354_v51  ;;  %1948 = vst [vmem:[#allocation11 + $0x18] sm:$0xff] %v1940_v8  ;;  %v1942_v50 = vadd.f32 %v1934_v59, %v956_v38 }
 0x544   :  { %v1943_v20 = vadd.f32 %v1935_v15, %v957_v56  ;;  %1949 = vst [vmem:[#allocation11 + $0x20] sm:$0xff] %v1941_v25 }
 0x545   :  { %v1944_v5 = vadd.f32 %v1936_v44, %v958_v17  ;;  %1950 = vst [vmem:[#allocation11 + $0x28] sm:$0xff] %v1942_v50 }
 0x546   :  { %1951 = vst [vmem:[#allocation11 + $0x30] sm:$0xff] %v1943_v20 }
 0x547   :  { %1952 = vst [vmem:[#allocation11 + $0x38] sm:$0xff] %v1944_v5 }
 0x548   :  { %2725 = shalt.err (!%p2722_p2)
}
 0x549   :  { %s2726_s9 = scalar_lea.hbm %s3391_s5, 1024 }
 0x54a   :  { %p2727_p3 = scmp.ne.s32.totalorder %s3391_s5, %s2726_s9  ;;  %p2730_p4 = scmp.lt.u32.totalorder %s2726_s9, %s3391_s5 }
 0x54c   :  { %p2732_p5 = pnand %p2730_p4, %p2727_p3 }
 0x54e   :  { %2735 = shalt.err (!%p2732_p5)
}
 0x54f   :  { %1964 = dma.vmem_to_hbm [thread:$0]  %s1959_s30, 1024, %s3391_s5, [#allocation4], %s2749_s18, %s2749_s18, %s2750_s19  }
 0x550   :  { %2742 = dma.done.wait [#allocation4], 1024  }
 0x551   :  { %2743 = vsyncadd [#allocation4], 4294966272 }
 0x552   :  { %1968 = vsyncpa [#allocation3], 1 }
 0x553   :  { %1969 = vsyncpa [#allocation6], 1 }
 0x554   :  { %1970 = vsyncpa [#allocation9], 1 }
 0x555   :  { %1971 = vsyncpa [#allocation4], 1 }

</bundles_post_ra>
